<compile_context>
chip_gen: v6e
topology: v6e:2x2x1
jax: 0.10.0
libtpu: 0.0.40
codegen_flags: <defaults>
</compile_context>

<pallas_src>
import functools

import jax
import jax.numpy as jnp
from jax import lax
from jax.experimental import pallas as pl
from jax.experimental.pallas import tpu as pltpu

EPS = 1e-5                           # PyTorch nn.LayerNorm default
MATMUL_DTYPE = jnp.bfloat16          # MXU operand dtype (f32 accumulate). jnp.float32 for exact f32.
INTERMEDIATE_DTYPE = jnp.bfloat16    # dtype of the two inter-kernel activations (query / h)


def _layernorm(y, gamma, beta):
    mu = jnp.mean(y, axis=-1, keepdims=True)
    d = y - mu
    var = jnp.mean(d * d, axis=-1, keepdims=True)
    return d * lax.rsqrt(var + EPS) * gamma + beta


def _vmem_limit(bytes_estimate):
    # 2x headroom over the static block estimate; floor at the v6e/v7x default (32 MiB,
    # > v5e's 16 MiB default), cap well under the 128 MiB parts.
    return int(max(32 << 20, min(2 * bytes_estimate, 112 << 20)))


# --------------------- fused attention + residual + LayerNorm kernel ---------------------
def _attn_block_kernel(*refs, heads, scale, self_attention, causal):
    if self_attention:
        if causal:
            (q_ref, wqkv_ref, wo_ref, bo_ref, g_ref, beta_ref, o_ref) = refs
            m_ref = None
        else:
            (q_ref, m_ref, wqkv_ref, wo_ref, bo_ref, g_ref, beta_ref, o_ref) = refs
    else:
        (v_ref, k_ref, q_ref, m_ref, wqkv_ref, wo_ref, bo_ref, g_ref, beta_ref, o_ref) = refs

    f32 = jnp.float32
    wqkv = wqkv_ref[...]                    # (E, 3E)  [Wq | Wk | Wv]
    wo = wo_ref[...]                        # (E, E)
    cdt = wqkv.dtype                        # MXU operand dtype
    E = wo.shape[0]
    Dh = E // heads

    q_res = q_ref[...].astype(f32)          # (Sq, E) residual kept in f32
    if self_attention:
        # one wide QKV matmul (lane-dense N = 3E)
        qkv = jnp.dot(q_res.astype(cdt), wqkv, preferred_element_type=f32)     # (Sq, 3E)
        Q, K, V = qkv[:, :E], qkv[:, E:2 * E], qkv[:, 2 * E:]
    else:
        Q = jnp.dot(q_res.astype(cdt), wqkv[:, :E], preferred_element_type=f32)
        K = jnp.dot(k_ref[...].astype(cdt), wqkv[:, E:2 * E], preferred_element_type=f32)
        V = jnp.dot(v_ref[...].astype(cdt), wqkv[:, 2 * E:], preferred_element_type=f32)

    Sq, Sk = Q.shape[0], K.shape[0]

    # Fold the 1/sqrt(E) scale into Q once (Sq*E mults) instead of per-head score scaling.
    Q = Q * scale

    # Hoist the mask -> additive bias conversion out of the head loop (one (Sq,Sk) select
    # instead of `heads`). For known-causal self-attention the bias is generated in-kernel.
    neg = jnp.float32(-1e30)
    if m_ref is None:
        row = lax.broadcasted_iota(jnp.int32, (Sq, Sk), 0)
        col = lax.broadcasted_iota(jnp.int32, (Sq, Sk), 1)
        bias = jnp.where(row >= col, jnp.float32(0.0), neg)                    # (Sq, Sk)
    else:
        bias = jnp.where(m_ref[...] == 0.0, neg, jnp.float32(0.0))             # (Sq,Sk)/(1,Sk)

    # Static unroll over heads: per-head 2-D MXU dots, softmax denom on the EUP.
    ctx_heads = []
    for h in range(heads):
        lo = h * Dh
        qh = Q[:, lo:lo + Dh].astype(cdt)   # (Sq, Dh)
        kh = K[:, lo:lo + Dh].astype(cdt)   # (Sk, Dh)
        vh = V[:, lo:lo + Dh].astype(cdt)   # (Sk, Dh)
        # scores: contract head_dim of q and k directly (no materialized K^T)
        e = lax.dot_general(qh, kh, (((1,), (1,)), ((), ())),
                            preferred_element_type=f32)                        # (Sq, Sk)
        e = e + bias
        e = e - jnp.max(e, axis=-1, keepdims=True)
        p = jnp.exp(e)
        p = p * pl.reciprocal(jnp.sum(p, axis=-1, keepdims=True), approx=True)
        ctx_heads.append(jnp.dot(p.astype(cdt), vh, preferred_element_type=f32))

    # Assemble heads along the lane axis and run ONE full-depth (K = E) output projection.
    ctx = jnp.concatenate(ctx_heads, axis=-1)                                  # (Sq, E)
    out = jnp.dot(ctx.astype(cdt), wo, preferred_element_type=f32)             # (Sq, E)

    y = out + bo_ref[...] + q_res           # out-proj bias + residual (residual == queries)
    o_ref[...] = _layernorm(y, g_ref[...], beta_ref[...]).astype(o_ref.dtype)


def attn_block(*, q_in, k_in, v_in, mask, wqkv, wo, bo, ln_g, ln_b,
               heads, scale, self_attention, causal=False, out_dtype=jnp.float32):
    """Fused (Q/K/V proj -> multi-head attention -> out proj -> +residual -> LayerNorm)."""
    B, Sq, E = q_in.shape
    Sk = Sq if self_attention else k_in.shape[1]
    use_mask = not (self_attention and causal)

    kernel = functools.partial(_attn_block_kernel, heads=heads, scale=scale,
                               self_attention=self_attention,
                               causal=self_attention and causal)

    w_specs = [
        pl.BlockSpec((E, 3 * E), lambda b: (0, 0)),   # wqkv
        pl.BlockSpec((E, E), lambda b: (0, 0)),       # wo
        pl.BlockSpec((1, E), lambda b: (0, 0)),       # bo
        pl.BlockSpec((1, E), lambda b: (0, 0)),       # ln gamma
        pl.BlockSpec((1, E), lambda b: (0, 0)),       # ln beta
    ]
    w_args = (wqkv, wo, bo.reshape(1, E), ln_g.reshape(1, E), ln_b.reshape(1, E))
    q_spec = pl.BlockSpec((None, Sq, E), lambda b: (b, 0, 0))

    in_specs, args = [], ()
    if not self_attention:
        kv_spec = pl.BlockSpec((None, Sk, E), lambda b: (b, 0, 0))
        in_specs += [kv_spec, kv_spec]
        args += (v_in, k_in)
    in_specs += [q_spec]
    args += (q_in,)
    if use_mask:
        Sm = mask.shape[1]
        in_specs += [pl.BlockSpec((None, Sm, Sk), lambda b: (b, 0, 0))]
        args += (mask,)
    in_specs += w_specs
    args += w_args

    # Explicit scoped-VMEM budget from the actual block sizes (v5e default is only 16 MiB).
    wbytes = jnp.dtype(wqkv.dtype).itemsize
    est = 2 * (4 * E * E + 5 * E) * wbytes                          # double-buffered weights
    est += 2 * Sq * E * jnp.dtype(q_in.dtype).itemsize              # q block
    if not self_attention:
        est += 2 * 2 * Sk * E * jnp.dtype(k_in.dtype).itemsize      # k, v blocks
    if use_mask:
        est += 2 * mask.shape[1] * Sk * jnp.dtype(mask.dtype).itemsize
    est += 2 * Sq * E * jnp.dtype(out_dtype).itemsize               # out block
    est += 4 * (Sq * 3 * E + 2 * Sq * Sk + 2 * Sq * E)              # f32 in-kernel intermediates

    return pl.pallas_call(
        kernel,
        out_shape=jax.ShapeDtypeStruct((B, Sq, E), out_dtype),
        grid=(B,),
        in_specs=in_specs,
        out_specs=pl.BlockSpec((None, Sq, E), lambda b: (b, 0, 0)),
        compiler_params=pltpu.CompilerParams(
            dimension_semantics=("parallel",),
            vmem_limit_bytes=_vmem_limit(est)),
    )(*args)


# ------------------------ fused FFN + residual + LayerNorm kernel ------------------------
def _ffn_ln_kernel(h_ref, w1_ref, b1_ref, w2_ref, b2_ref, g_ref, beta_ref, o_ref, acc_ref):
    f32 = jnp.float32
    fi = pl.program_id(1)                    # reduction (F-tile) axis, innermost

    @pl.when(fi == 0)
    def _():
        acc_ref[...] = jnp.zeros_like(acc_ref)

    cdt = w1_ref.dtype
    h = h_ref[...]                           # (TM, E)
    z = jnp.dot(h.astype(cdt), w1_ref[...], preferred_element_type=f32) + b1_ref[...]
    z = jnp.maximum(z, 0.0)                  # ReLU (elementwise on F -> safe to tile F)
    acc_ref[...] += jnp.dot(z.astype(cdt), w2_ref[...], preferred_element_type=f32)

    @pl.when(fi == pl.num_programs(1) - 1)
    def _():
        y = acc_ref[...] + b2_ref[...] + h_ref[...].astype(f32)   # bias + residual
        o_ref[...] = _layernorm(y, g_ref[...], beta_ref[...]).astype(o_ref.dtype)


def _round_up(n, m):
    return -(-n // m) * m


def _pick_row_tile(m, cap=1024):
    # Big row tiles amortize per-step pipeline overhead; the cdiv grid + masked OOB writeback
    # handles non-divisible M, so awkward M no longer collapses to tiny tiles.
    return min(cap, _round_up(m, 8))


def _largest_divisor_tile(n, candidates):
    # Reduction-axis tiles must divide exactly (padding garbage would pollute the accumulator).
    for t in candidates:
        if t <= n and n % t == 0:
            return t
    return n


def ffn_block(h2d, w1, b1, w2, b2, ln_g, ln_b, out_dtype=jnp.float32):
    """Fused (Linear -> ReLU -> Linear -> +residual -> LayerNorm), tiled over rows and F."""
    M, E = h2d.shape
    F = w1.shape[1]
    TM = _pick_row_tile(M)
    TF = _largest_divisor_tile(F, (2048, 1024, 512, 256, 128))
    grid = (pl.cdiv(M, TM), F // TF)         # reduction axis last

    wbytes = jnp.dtype(w1.dtype).itemsize
    est = 2 * (E * TF + TF * E + TF + 3 * E) * wbytes               # double-buffered weight tiles
    est += 2 * TM * E * jnp.dtype(h2d.dtype).itemsize               # h block
    est += 2 * TM * E * jnp.dtype(out_dtype).itemsize               # out block
    est += 4 * (TM * E + 2 * TM * TF)                               # accumulator + z intermediate

    return pl.pallas_call(
        _ffn_ln_kernel,
        out_shape=jax.ShapeDtypeStruct((M, E), out_dtype),
        grid=grid,
        in_specs=[
            pl.BlockSpec((TM, E), lambda i, f: (i, 0)),   # h (rows)
            pl.BlockSpec((E, TF), lambda i, f: (0, f)),   # w1 (F-tiled)
            pl.BlockSpec((1, TF), lambda i, f: (0, f)),   # b1 (F-tiled)
            pl.BlockSpec((TF, E), lambda i, f: (f, 0)),   # w2 (F-tiled)
            pl.BlockSpec((1, E), lambda i, f: (0, 0)),    # b2
            pl.BlockSpec((1, E), lambda i, f: (0, 0)),    # ln gamma
            pl.BlockSpec((1, E), lambda i, f: (0, 0)),    # ln beta
        ],
        out_specs=pl.BlockSpec((TM, E), lambda i, f: (i, 0)),
        scratch_shapes=[pltpu.VMEM((TM, E), jnp.float32)],           # f32 accumulator
        compiler_params=pltpu.CompilerParams(
            dimension_semantics=("parallel", "arbitrary"),
            vmem_limit_bytes=_vmem_limit(est)),
    )(h2d, w1, b1.reshape(1, F), w2, b2.reshape(1, E),
      ln_g.reshape(1, E), ln_b.reshape(1, E))


# ----------------------------- module-level composition ---------------------------------
def decoder_block_forward(params, x, value, key, src_mask, trg_mask, heads,
                          assume_causal_trg=False):
    B, St, E = x.shape
    assert E % heads == 0
    scale = 1.0 / (float(E) ** 0.5)          # reference uses softmax(energy / sqrt(embed_size))

    # 1) masked self-attention + add&LayerNorm (Dropout = identity at eval)
    sa = params["self_attn"]
    query = attn_block(q_in=x, k_in=None, v_in=None,
                       mask=None if assume_causal_trg else trg_mask[:, 0],    # (B, St, St)
                       wqkv=sa["wqkv"], wo=sa["wo"], bo=sa["bo"],
                       ln_g=params["ln_g"], ln_b=params["ln_b"],
                       heads=heads, scale=scale, self_attention=True,
                       causal=assume_causal_trg, out_dtype=INTERMEDIATE_DTYPE)

    # 2) cross-attention (TransformerBlock attention) + add&LayerNorm
    ca = params["cross_attn"]
    h = attn_block(q_in=query, k_in=key, v_in=value,
                   mask=src_mask[:, 0],                                       # (B, 1, S_src)
                   wqkv=ca["wqkv"], wo=ca["wo"], bo=ca["bo"],
                   ln_g=params["tb_ln1_g"], ln_b=params["tb_ln1_b"],
                   heads=heads, scale=scale, self_attention=False,
                   out_dtype=INTERMEDIATE_DTYPE)

    # 3) feed-forward + add&LayerNorm (module output stays f32)
    out = ffn_block(h.reshape(B * St, E),
                    params["ff_w1"], params["ff_b1"],
                    params["ff_w2"], params["ff_b2"],
                    params["tb_ln2_g"], params["tb_ln2_b"],
                    out_dtype=jnp.float32)
    return out.reshape(B, St, E)


def init_params(rng, embed, forward_expansion):
    E, F = embed, forward_expansion * embed

    def w(k, shape):
        return jax.random.normal(k, shape, jnp.float32) * 0.02

    ks = jax.random.split(rng, 10)

    def attn_params(kq, kk, kv, ko):
        wq, wk, wv = w(kq, (E, E)), w(kk, (E, E)), w(kv, (E, E))
        return {
            "wqkv": jnp.concatenate([wq, wk, wv], axis=1).astype(MATMUL_DTYPE),  # (E, 3E)
            "wo": w(ko, (E, E)).astype(MATMUL_DTYPE),
            "bo": jnp.zeros((E,), jnp.float32),
        }

    return {
        "self_attn": attn_params(ks[0], ks[1], ks[2], ks[3]),
        "cross_attn": attn_params(ks[4], ks[5], ks[6], ks[7]),
        "ln_g": jnp.ones((E,), jnp.float32), "ln_b": jnp.zeros((E,), jnp.float32),
        "tb_ln1_g": jnp.ones((E,), jnp.float32), "tb_ln1_b": jnp.zeros((E,), jnp.float32),
        "tb_ln2_g": jnp.ones((E,), jnp.float32), "tb_ln2_b": jnp.zeros((E,), jnp.float32),
        "ff_w1": w(ks[8], (E, F)).astype(MATMUL_DTYPE), "ff_b1": jnp.zeros((F,), jnp.float32),
        "ff_w2": w(ks[9], (F, E)).astype(MATMUL_DTYPE), "ff_b2": jnp.zeros((E,), jnp.float32),
    }


if __name__ == "__main__":
    B, S_trg, S_src = 2, 8, 8
    embed_size, heads, forward_expansion = 32, 4, 4
    # dropout=0.1 in __init__, but Dropout is identity at inference time.

    rng = jax.random.PRNGKey(0)
    k_x, k_v, k_k, k_p = jax.random.split(rng, 4)
    x = jax.random.normal(k_x, (B, S_trg, embed_size), jnp.float32)
    value = jax.random.normal(k_v, (B, S_src, embed_size), jnp.float32)
    key = jax.random.normal(k_k, (B, S_src, embed_size), jnp.float32)
    # masks: 1 = attend, 0 = masked (masked_fill(mask == 0, -inf-like) semantics)
    trg_mask = jnp.broadcast_to(
        jnp.tril(jnp.ones((S_trg, S_trg), jnp.float32))[None, None],
        (B, 1, S_trg, S_trg))                                   # (B, 1, S_trg, S_trg)
    src_mask = jnp.ones((B, 1, 1, S_src), jnp.float32)          # (B, 1, 1, S_src)

    params = init_params(k_p, embed_size, forward_expansion)

    # General path: uses the trg_mask tensor exactly as the PyTorch module does.
    fwd_general = jax.jit(functools.partial(decoder_block_forward, heads=heads,
                                            assume_causal_trg=False))
    # Optimized path: trg_mask is known causal -> generated in-kernel, no mask DMA.
    fwd_causal = jax.jit(functools.partial(decoder_block_forward, heads=heads,
                                           assume_causal_trg=True))

    out = fwd_general(params, x, value, key, src_mask, trg_mask)
    out_c = fwd_causal(params, x, value, key, src_mask, trg_mask)
    jax.block_until_ready((out, out_c))

    assert out.shape == (B, S_trg, embed_size) and out.dtype == jnp.float32
    assert jnp.allclose(out, out_c, atol=1e-3, rtol=1e-3)       # both mask paths agree
    print("KERNEL_OK")
</pallas_src>

<mosaic_0001>
module attributes {stable_mosaic.version = 11 : i64} {
  func.func @_ffn_ln_kernel(%arg0: i32, %arg1: i32, %arg2: memref<16x32xbf16, #tpu.memory_space<vmem>>, %arg3: memref<32x128xbf16, #tpu.memory_space<vmem>>, %arg4: memref<1x128xf32, #tpu.memory_space<vmem>>, %arg5: memref<128x32xbf16, #tpu.memory_space<vmem>>, %arg6: memref<1x32xf32, #tpu.memory_space<vmem>>, %arg7: memref<1x32xf32, #tpu.memory_space<vmem>>, %arg8: memref<1x32xf32, #tpu.memory_space<vmem>>, %arg9: memref<16x32xf32, #tpu.memory_space<vmem>>, %arg10: memref<16x32xf32, #tpu.memory_space<vmem>>) attributes {dimension_semantics = [#tpu.dimension_semantics<parallel>, #tpu.dimension_semantics<arbitrary>], iteration_bounds = array<i64: 1, 1>, scalar_prefetch = 0 : i64, scratch_operands = 1 : i64, tpu.core_type = #tpu.core_type<tc>, window_params = [{transform_indices = @transform_0, window_bounds = array<i64: 16, 32>}, {transform_indices = @transform_1, window_bounds = array<i64: 32, 128>}, {transform_indices = @transform_2, window_bounds = array<i64: 1, 128>}, {transform_indices = @transform_3, window_bounds = array<i64: 128, 32>}, {pipeline_mode = #tpu.pipeline_mode<synchronous>, transform_indices = @transform_4, window_bounds = array<i64: 1, 32>}, {pipeline_mode = #tpu.pipeline_mode<synchronous>, transform_indices = @transform_5, window_bounds = array<i64: 1, 32>}, {pipeline_mode = #tpu.pipeline_mode<synchronous>, transform_indices = @transform_6, window_bounds = array<i64: 1, 32>}, {transform_indices = @transform_7, window_bounds = array<i64: 16, 32>}]} {
    %c0_i32 = arith.constant 0 : i32
    %0 = arith.cmpi eq, %arg1, %c0_i32 : i32
    %1 = arith.extui %0 : i1 to i32
    %c0_i32_0 = arith.constant 0 : i32
    %2 = arith.cmpi ne, %1, %c0_i32_0 : i32
    scf.if %2 {
      %cst_16 = arith.constant 0.000000e+00 : f32
      %20 = vector.broadcast %cst_16 : f32 to vector<16x32xf32>
      %c0_17 = arith.constant 0 : index
      %c0_18 = arith.constant 0 : index
      %21 = vector.load %arg10[%c0_17, %c0_18] : memref<16x32xf32, #tpu.memory_space<vmem>>, vector<16x32xf32>
      tpu.vector_store %arg10[%c0_17, %c0_18], %20 {strides = array<i32>} : memref<16x32xf32, #tpu.memory_space<vmem>>, vector<16x32xf32>,
    } else {
    }
    %c0 = arith.constant 0 : index
    %c0_1 = arith.constant 0 : index
    %3 = vector.load %arg2[%c0, %c0_1] : memref<16x32xbf16, #tpu.memory_space<vmem>>, vector<16x32xbf16>
    %c0_2 = arith.constant 0 : index
    %c0_3 = arith.constant 0 : index
    %4 = vector.load %arg3[%c0_2, %c0_3] : memref<32x128xbf16, #tpu.memory_space<vmem>>, vector<32x128xbf16>
    %cst = arith.constant dense<0.000000e+00> : vector<16x128xf32>
    %5 = tpu.matmul %3, %4, %cst {dimension_numbers = #tpu.dot_dimension_numbers<[1], [0], [0], [1], [0, 0, 1, 1], [], []>} : vector<16x32xbf16>, vector<32x128xbf16>, vector<16x128xf32> -> vector<16x128xf32>
    %c0_4 = arith.constant 0 : index
    %c0_5 = arith.constant 0 : index
    %6 = vector.load %arg4[%c0_4, %c0_5] : memref<1x128xf32, #tpu.memory_space<vmem>>, vector<1x128xf32>
    %7 = vector.broadcast %6 : vector<1x128xf32> to vector<16x128xf32>
    %8 = arith.addf %5, %7 : vector<16x128xf32>
    %cst_6 = arith.constant 0.000000e+00 : f32
    %9 = vector.broadcast %cst_6 : f32 to vector<16x128xf32>
    %10 = arith.maximumf %8, %9 : vector<16x128xf32>
    %c0_7 = arith.constant 0 : index
    %c0_8 = arith.constant 0 : index
    %11 = vector.load %arg10[%c0_7, %c0_8] : memref<16x32xf32, #tpu.memory_space<vmem>>, vector<16x32xf32>
    %12 = arith.truncf %10 : vector<16x128xf32> to vector<16x128xbf16>
    %c0_9 = arith.constant 0 : index
    %c0_10 = arith.constant 0 : index
    %13 = vector.load %arg5[%c0_9, %c0_10] : memref<128x32xbf16, #tpu.memory_space<vmem>>, vector<128x32xbf16>
    %cst_11 = arith.constant dense<0.000000e+00> : vector<16x32xf32>
    %14 = tpu.matmul %12, %13, %cst_11 {dimension_numbers = #tpu.dot_dimension_numbers<[1], [0], [0], [1], [0, 0, 1, 1], [], []>} : vector<16x128xbf16>, vector<128x32xbf16>, vector<16x32xf32> -> vector<16x32xf32>
    %15 = arith.addf %11, %14 : vector<16x32xf32>
    %c0_12 = arith.constant 0 : index
    %c0_13 = arith.constant 0 : index
    %16 = vector.load %arg10[%c0_12, %c0_13] : memref<16x32xf32, #tpu.memory_space<vmem>>, vector<16x32xf32>
    tpu.vector_store %arg10[%c0_12, %c0_13], %15 {strides = array<i32>} : memref<16x32xf32, #tpu.memory_space<vmem>>, vector<16x32xf32>,
    %c0_i32_14 = arith.constant 0 : i32
    %17 = arith.cmpi eq, %arg1, %c0_i32_14 : i32
    %18 = arith.extui %17 : i1 to i32
    %c0_i32_15 = arith.constant 0 : i32
    %19 = arith.cmpi ne, %18, %c0_i32_15 : i32
    scf.if %19 {
      %c0_16 = arith.constant 0 : index
      %c0_17 = arith.constant 0 : index
      %20 = vector.load %arg10[%c0_16, %c0_17] : memref<16x32xf32, #tpu.memory_space<vmem>>, vector<16x32xf32>
      %c0_18 = arith.constant 0 : index
      %c0_19 = arith.constant 0 : index
      %21 = vector.load %arg6[%c0_18, %c0_19] : memref<1x32xf32, #tpu.memory_space<vmem>>, vector<1x32xf32>
      %22 = vector.broadcast %21 : vector<1x32xf32> to vector<16x32xf32>
      %23 = arith.addf %20, %22 : vector<16x32xf32>
      %c0_20 = arith.constant 0 : index
      %c0_21 = arith.constant 0 : index
      %24 = vector.load %arg2[%c0_20, %c0_21] : memref<16x32xbf16, #tpu.memory_space<vmem>>, vector<16x32xbf16>
      %25 = arith.extf %24 : vector<16x32xbf16> to vector<16x32xf32>
      %26 = arith.addf %23, %25 : vector<16x32xf32>
      %c0_22 = arith.constant 0 : index
      %c0_23 = arith.constant 0 : index
      %27 = vector.load %arg7[%c0_22, %c0_23] : memref<1x32xf32, #tpu.memory_space<vmem>>, vector<1x32xf32>
      %c0_24 = arith.constant 0 : index
      %c0_25 = arith.constant 0 : index
      %28 = vector.load %arg8[%c0_24, %c0_25] : memref<1x32xf32, #tpu.memory_space<vmem>>, vector<1x32xf32>
      %cst_26 = arith.constant dense<0.000000e+00> : vector<16xf32>
      %29 = vector.multi_reduction <add>, %26, %cst_26 [1] : vector<16x32xf32> to vector<16xf32>
      %30 = vector.shape_cast %29 : vector<16xf32> to vector<16x1xf32>
      %cst_27 = arith.constant 3.200000e+01 : f32
      %31 = vector.broadcast %cst_27 : f32 to vector<16x1xf32>
      %32 = arith.divf %30, %31 : vector<16x1xf32>
      %33 = vector.broadcast %32 : vector<16x1xf32> to vector<16x32xf32>
      %34 = arith.subf %26, %33 : vector<16x32xf32>
      %35 = arith.mulf %34, %34 : vector<16x32xf32>
      %cst_28 = arith.constant dense<0.000000e+00> : vector<16xf32>
      %36 = vector.multi_reduction <add>, %35, %cst_28 [1] : vector<16x32xf32> to vector<16xf32>
      %37 = vector.shape_cast %36 : vector<16xf32> to vector<16x1xf32>
      %cst_29 = arith.constant 3.200000e+01 : f32
      %38 = vector.broadcast %cst_29 : f32 to vector<16x1xf32>
      %39 = arith.divf %37, %38 : vector<16x1xf32>
      %cst_30 = arith.constant 9.99999974E-6 : f32
      %40 = vector.broadcast %cst_30 : f32 to vector<16x1xf32>
      %41 = arith.addf %39, %40 : vector<16x1xf32>
      %42 = math.rsqrt %41 : vector<16x1xf32>
      %43 = vector.broadcast %42 : vector<16x1xf32> to vector<16x32xf32>
      %44 = arith.mulf %34, %43 : vector<16x32xf32>
      %45 = vector.broadcast %27 : vector<1x32xf32> to vector<16x32xf32>
      %46 = arith.mulf %44, %45 : vector<16x32xf32>
      %47 = vector.broadcast %28 : vector<1x32xf32> to vector<16x32xf32>
      %48 = arith.addf %46, %47 : vector<16x32xf32>
      %c0_31 = arith.constant 0 : index
      %c0_32 = arith.constant 0 : index
      %49 = vector.load %arg9[%c0_31, %c0_32] : memref<16x32xf32, #tpu.memory_space<vmem>>, vector<16x32xf32>
      tpu.vector_store %arg9[%c0_31, %c0_32], %48 {strides = array<i32>} : memref<16x32xf32, #tpu.memory_space<vmem>>, vector<16x32xf32>,
    } else {
    }
    return
  }
  func.func @transform_0(%arg0: i32, %arg1: i32) -> (i32, i32) {
    %c0_i32 = arith.constant 0 : i32
    %c0_i32_0 = arith.constant 0 : i32
    return %arg0, %c0_i32 : i32, i32
  }
  func.func @transform_1(%arg0: i32, %arg1: i32) -> (i32, i32) {
    %c0_i32 = arith.constant 0 : i32
    %c0_i32_0 = arith.constant 0 : i32
    return %c0_i32, %arg1 : i32, i32
  }
  func.func @transform_2(%arg0: i32, %arg1: i32) -> (i32, i32) {
    %c0_i32 = arith.constant 0 : i32
    %c0_i32_0 = arith.constant 0 : i32
    return %c0_i32, %arg1 : i32, i32
  }
  func.func @transform_3(%arg0: i32, %arg1: i32) -> (i32, i32) {
    %c0_i32 = arith.constant 0 : i32
    %c0_i32_0 = arith.constant 0 : i32
    return %arg1, %c0_i32 : i32, i32
  }
  func.func @transform_4(%arg0: i32, %arg1: i32) -> (i32, i32) {
    %c0_i32 = arith.constant 0 : i32
    %c0_i32_0 = arith.constant 0 : i32
    %c0_i32_1 = arith.constant 0 : i32
    return %c0_i32, %c0_i32_0 : i32, i32
  }
  func.func @transform_5(%arg0: i32, %arg1: i32) -> (i32, i32) {
    %c0_i32 = arith.constant 0 : i32
    %c0_i32_0 = arith.constant 0 : i32
    %c0_i32_1 = arith.constant 0 : i32
    return %c0_i32, %c0_i32_0 : i32, i32
  }
  func.func @transform_6(%arg0: i32, %arg1: i32) -> (i32, i32) {
    %c0_i32 = arith.constant 0 : i32
    %c0_i32_0 = arith.constant 0 : i32
    %c0_i32_1 = arith.constant 0 : i32
    return %c0_i32, %c0_i32_0 : i32, i32
  }
  func.func @transform_7(%arg0: i32, %arg1: i32) -> (i32, i32) {
    %c0_i32 = arith.constant 0 : i32
    %c0_i32_0 = arith.constant 0 : i32
    return %arg0, %c0_i32 : i32, i32
  }
}

module attributes {stable_mosaic.version = 11 : i64} {
  func.func @_attn_block_kernel(%arg0: i32, %arg1: memref<1x8x32xf32, #tpu.memory_space<vmem>>, %arg2: memref<1x8x8xf32, #tpu.memory_space<vmem>>, %arg3: memref<32x96xbf16, #tpu.memory_space<vmem>>, %arg4: memref<32x32xbf16, #tpu.memory_space<vmem>>, %arg5: memref<1x32xf32, #tpu.memory_space<vmem>>, %arg6: memref<1x32xf32, #tpu.memory_space<vmem>>, %arg7: memref<1x32xf32, #tpu.memory_space<vmem>>, %arg8: memref<1x8x32xbf16, #tpu.memory_space<vmem>>) attributes {dimension_semantics = [#tpu.dimension_semantics<parallel>], iteration_bounds = array<i64: 2>, scalar_prefetch = 0 : i64, scratch_operands = 0 : i64, tpu.core_type = #tpu.core_type<tc>, window_params = [{transform_indices = @transform_0, window_bounds = array<i64: 1, 8, 32>}, {transform_indices = @transform_1, window_bounds = array<i64: 1, 8, 8>}, {pipeline_mode = #tpu.pipeline_mode<synchronous>, transform_indices = @transform_2, window_bounds = array<i64: 32, 96>}, {pipeline_mode = #tpu.pipeline_mode<synchronous>, transform_indices = @transform_3, window_bounds = array<i64: 32, 32>}, {pipeline_mode = #tpu.pipeline_mode<synchronous>, transform_indices = @transform_4, window_bounds = array<i64: 1, 32>}, {pipeline_mode = #tpu.pipeline_mode<synchronous>, transform_indices = @transform_5, window_bounds = array<i64: 1, 32>}, {pipeline_mode = #tpu.pipeline_mode<synchronous>, transform_indices = @transform_6, window_bounds = array<i64: 1, 32>}, {transform_indices = @transform_7, window_bounds = array<i64: 1, 8, 32>}]} {
    %c0 = arith.constant 0 : index
    %c0_0 = arith.constant 0 : index
    %0 = vector.load %arg3[%c0, %c0_0] : memref<32x96xbf16, #tpu.memory_space<vmem>>, vector<32x96xbf16>
    %c0_1 = arith.constant 0 : index
    %c0_2 = arith.constant 0 : index
    %1 = vector.load %arg4[%c0_1, %c0_2] : memref<32x32xbf16, #tpu.memory_space<vmem>>, vector<32x32xbf16>
    %c0_3 = arith.constant 0 : index
    %c0_4 = arith.constant 0 : index
    %c0_5 = arith.constant 0 : index
    %2 = vector.load %arg1[%c0_3, %c0_4, %c0_5] : memref<1x8x32xf32, #tpu.memory_space<vmem>>, vector<1x8x32xf32>
    %3 = vector.shape_cast %2 : vector<1x8x32xf32> to vector<8x32xf32>
    %4 = arith.truncf %3 : vector<8x32xf32> to vector<8x32xbf16>
    %cst = arith.constant dense<0.000000e+00> : vector<8x96xf32>
    %5 = tpu.matmul %4, %0, %cst {dimension_numbers = #tpu.dot_dimension_numbers<[1], [0], [0], [1], [0, 0, 1, 1], [], []>} : vector<8x32xbf16>, vector<32x96xbf16>, vector<8x96xf32> -> vector<8x96xf32>
    %6 = vector.extract_strided_slice %5 {offsets = [0, 0], sizes = [8, 32], strides = [1, 1]} : vector<8x96xf32> to vector<8x32xf32>
    %7 = vector.extract_strided_slice %5 {offsets = [0, 32], sizes = [8, 32], strides = [1, 1]} : vector<8x96xf32> to vector<8x32xf32>
    %8 = vector.extract_strided_slice %5 {offsets = [0, 64], sizes = [8, 32], strides = [1, 1]} : vector<8x96xf32> to vector<8x32xf32>
    %cst_6 = arith.constant 0.176776692 : f32
    %9 = vector.broadcast %cst_6 : f32 to vector<8x32xf32>
    %10 = arith.mulf %6, %9 : vector<8x32xf32>
    %c0_7 = arith.constant 0 : index
    %c0_8 = arith.constant 0 : index
    %c0_9 = arith.constant 0 : index
    %11 = vector.load %arg2[%c0_7, %c0_8, %c0_9] : memref<1x8x8xf32, #tpu.memory_space<vmem>>, vector<1x8x8xf32>
    %12 = vector.shape_cast %11 : vector<1x8x8xf32> to vector<8x8xf32>
    %cst_10 = arith.constant 0.000000e+00 : f32
    %13 = vector.broadcast %cst_10 : f32 to vector<8x8xf32>
    %14 = arith.cmpf oeq, %12, %13 : vector<8x8xf32>
    %cst_11 = arith.constant -1.000000e+30 : f32
    %cst_12 = arith.constant 0.000000e+00 : f32
    %15 = vector.broadcast %cst_11 : f32 to vector<8x8xf32>
    %16 = vector.broadcast %cst_12 : f32 to vector<8x8xf32>
    %17 = arith.select %14, %15, %16 : vector<8x8xi1>, vector<8x8xf32>
    %18 = vector.extract_strided_slice %10 {offsets = [0, 0], sizes = [8, 8], strides = [1, 1]} : vector<8x32xf32> to vector<8x8xf32>
    %19 = arith.truncf %18 : vector<8x8xf32> to vector<8x8xbf16>
    %20 = vector.extract_strided_slice %7 {offsets = [0, 0], sizes = [8, 8], strides = [1, 1]} : vector<8x32xf32> to vector<8x8xf32>
    %21 = arith.truncf %20 : vector<8x8xf32> to vector<8x8xbf16>
    %22 = vector.extract_strided_slice %8 {offsets = [0, 0], sizes = [8, 8], strides = [1, 1]} : vector<8x32xf32> to vector<8x8xf32>
    %23 = arith.truncf %22 : vector<8x8xf32> to vector<8x8xbf16>
    %cst_13 = arith.constant dense<0.000000e+00> : vector<8x8xf32>
    %24 = tpu.matmul %19, %21, %cst_13 {dimension_numbers = #tpu.dot_dimension_numbers<[1], [1], [0], [0], [0, 0, 1, 0], [], []>} : vector<8x8xbf16>, vector<8x8xbf16>, vector<8x8xf32> -> vector<8x8xf32>
    %25 = arith.addf %24, %17 : vector<8x8xf32>
    %cst_14 = arith.constant dense<0xFF800000> : vector<8xf32>
    %26 = vector.multi_reduction <maximumf>, %25, %cst_14 [1] : vector<8x8xf32> to vector<8xf32>
    %27 = vector.shape_cast %26 : vector<8xf32> to vector<8x1xf32>
    %28 = vector.broadcast %27 : vector<8x1xf32> to vector<8x8xf32>
    %29 = arith.subf %25, %28 : vector<8x8xf32>
    %30 = math.exp %29 : vector<8x8xf32>
    %cst_15 = arith.constant dense<0.000000e+00> : vector<8xf32>
    %31 = vector.multi_reduction <add>, %30, %cst_15 [1] : vector<8x8xf32> to vector<8xf32>
    %32 = vector.shape_cast %31 : vector<8xf32> to vector<8x1xf32>
    %33 = tpu.reciprocal %32 {approx = true} : vector<8x1xf32> -> vector<8x1xf32>
    %34 = vector.broadcast %33 : vector<8x1xf32> to vector<8x8xf32>
    %35 = arith.mulf %30, %34 : vector<8x8xf32>
    %36 = arith.truncf %35 : vector<8x8xf32> to vector<8x8xbf16>
    %cst_16 = arith.constant dense<0.000000e+00> : vector<8x8xf32>
    %37 = tpu.matmul %36, %23, %cst_16 {dimension_numbers = #tpu.dot_dimension_numbers<[1], [0], [0], [1], [0, 0, 1, 1], [], []>} : vector<8x8xbf16>, vector<8x8xbf16>, vector<8x8xf32> -> vector<8x8xf32>
    %38 = vector.extract_strided_slice %10 {offsets = [0, 8], sizes = [8, 8], strides = [1, 1]} : vector<8x32xf32> to vector<8x8xf32>
    %39 = arith.truncf %38 : vector<8x8xf32> to vector<8x8xbf16>
    %40 = vector.extract_strided_slice %7 {offsets = [0, 8], sizes = [8, 8], strides = [1, 1]} : vector<8x32xf32> to vector<8x8xf32>
    %41 = arith.truncf %40 : vector<8x8xf32> to vector<8x8xbf16>
    %42 = vector.extract_strided_slice %8 {offsets = [0, 8], sizes = [8, 8], strides = [1, 1]} : vector<8x32xf32> to vector<8x8xf32>
    %43 = arith.truncf %42 : vector<8x8xf32> to vector<8x8xbf16>
    %cst_17 = arith.constant dense<0.000000e+00> : vector<8x8xf32>
    %44 = tpu.matmul %39, %41, %cst_17 {dimension_numbers = #tpu.dot_dimension_numbers<[1], [1], [0], [0], [0, 0, 1, 0], [], []>} : vector<8x8xbf16>, vector<8x8xbf16>, vector<8x8xf32> -> vector<8x8xf32>
    %45 = arith.addf %44, %17 : vector<8x8xf32>
    %cst_18 = arith.constant dense<0xFF800000> : vector<8xf32>
    %46 = vector.multi_reduction <maximumf>, %45, %cst_18 [1] : vector<8x8xf32> to vector<8xf32>
    %47 = vector.shape_cast %46 : vector<8xf32> to vector<8x1xf32>
    %48 = vector.broadcast %47 : vector<8x1xf32> to vector<8x8xf32>
    %49 = arith.subf %45, %48 : vector<8x8xf32>
    %50 = math.exp %49 : vector<8x8xf32>
    %cst_19 = arith.constant dense<0.000000e+00> : vector<8xf32>
    %51 = vector.multi_reduction <add>, %50, %cst_19 [1] : vector<8x8xf32> to vector<8xf32>
    %52 = vector.shape_cast %51 : vector<8xf32> to vector<8x1xf32>
    %53 = tpu.reciprocal %52 {approx = true} : vector<8x1xf32> -> vector<8x1xf32>
    %54 = vector.broadcast %53 : vector<8x1xf32> to vector<8x8xf32>
    %55 = arith.mulf %50, %54 : vector<8x8xf32>
    %56 = arith.truncf %55 : vector<8x8xf32> to vector<8x8xbf16>
    %cst_20 = arith.constant dense<0.000000e+00> : vector<8x8xf32>
    %57 = tpu.matmul %56, %43, %cst_20 {dimension_numbers = #tpu.dot_dimension_numbers<[1], [0], [0], [1], [0, 0, 1, 1], [], []>} : vector<8x8xbf16>, vector<8x8xbf16>, vector<8x8xf32> -> vector<8x8xf32>
    %58 = vector.extract_strided_slice %10 {offsets = [0, 16], sizes = [8, 8], strides = [1, 1]} : vector<8x32xf32> to vector<8x8xf32>
    %59 = arith.truncf %58 : vector<8x8xf32> to vector<8x8xbf16>
    %60 = vector.extract_strided_slice %7 {offsets = [0, 16], sizes = [8, 8], strides = [1, 1]} : vector<8x32xf32> to vector<8x8xf32>
    %61 = arith.truncf %60 : vector<8x8xf32> to vector<8x8xbf16>
    %62 = vector.extract_strided_slice %8 {offsets = [0, 16], sizes = [8, 8], strides = [1, 1]} : vector<8x32xf32> to vector<8x8xf32>
    %63 = arith.truncf %62 : vector<8x8xf32> to vector<8x8xbf16>
    %cst_21 = arith.constant dense<0.000000e+00> : vector<8x8xf32>
    %64 = tpu.matmul %59, %61, %cst_21 {dimension_numbers = #tpu.dot_dimension_numbers<[1], [1], [0], [0], [0, 0, 1, 0], [], []>} : vector<8x8xbf16>, vector<8x8xbf16>, vector<8x8xf32> -> vector<8x8xf32>
    %65 = arith.addf %64, %17 : vector<8x8xf32>
    %cst_22 = arith.constant dense<0xFF800000> : vector<8xf32>
    %66 = vector.multi_reduction <maximumf>, %65, %cst_22 [1] : vector<8x8xf32> to vector<8xf32>
    %67 = vector.shape_cast %66 : vector<8xf32> to vector<8x1xf32>
    %68 = vector.broadcast %67 : vector<8x1xf32> to vector<8x8xf32>
    %69 = arith.subf %65, %68 : vector<8x8xf32>
    %70 = math.exp %69 : vector<8x8xf32>
    %cst_23 = arith.constant dense<0.000000e+00> : vector<8xf32>
    %71 = vector.multi_reduction <add>, %70, %cst_23 [1] : vector<8x8xf32> to vector<8xf32>
    %72 = vector.shape_cast %71 : vector<8xf32> to vector<8x1xf32>
    %73 = tpu.reciprocal %72 {approx = true} : vector<8x1xf32> -> vector<8x1xf32>
    %74 = vector.broadcast %73 : vector<8x1xf32> to vector<8x8xf32>
    %75 = arith.mulf %70, %74 : vector<8x8xf32>
    %76 = arith.truncf %75 : vector<8x8xf32> to vector<8x8xbf16>
    %cst_24 = arith.constant dense<0.000000e+00> : vector<8x8xf32>
    %77 = tpu.matmul %76, %63, %cst_24 {dimension_numbers = #tpu.dot_dimension_numbers<[1], [0], [0], [1], [0, 0, 1, 1], [], []>} : vector<8x8xbf16>, vector<8x8xbf16>, vector<8x8xf32> -> vector<8x8xf32>
    %78 = vector.extract_strided_slice %10 {offsets = [0, 24], sizes = [8, 8], strides = [1, 1]} : vector<8x32xf32> to vector<8x8xf32>
    %79 = arith.truncf %78 : vector<8x8xf32> to vector<8x8xbf16>
    %80 = vector.extract_strided_slice %7 {offsets = [0, 24], sizes = [8, 8], strides = [1, 1]} : vector<8x32xf32> to vector<8x8xf32>
    %81 = arith.truncf %80 : vector<8x8xf32> to vector<8x8xbf16>
    %82 = vector.extract_strided_slice %8 {offsets = [0, 24], sizes = [8, 8], strides = [1, 1]} : vector<8x32xf32> to vector<8x8xf32>
    %83 = arith.truncf %82 : vector<8x8xf32> to vector<8x8xbf16>
    %cst_25 = arith.constant dense<0.000000e+00> : vector<8x8xf32>
    %84 = tpu.matmul %79, %81, %cst_25 {dimension_numbers = #tpu.dot_dimension_numbers<[1], [1], [0], [0], [0, 0, 1, 0], [], []>} : vector<8x8xbf16>, vector<8x8xbf16>, vector<8x8xf32> -> vector<8x8xf32>
    %85 = arith.addf %84, %17 : vector<8x8xf32>
    %cst_26 = arith.constant dense<0xFF800000> : vector<8xf32>
    %86 = vector.multi_reduction <maximumf>, %85, %cst_26 [1] : vector<8x8xf32> to vector<8xf32>
    %87 = vector.shape_cast %86 : vector<8xf32> to vector<8x1xf32>
    %88 = vector.broadcast %87 : vector<8x1xf32> to vector<8x8xf32>
    %89 = arith.subf %85, %88 : vector<8x8xf32>
    %90 = math.exp %89 : vector<8x8xf32>
    %cst_27 = arith.constant dense<0.000000e+00> : vector<8xf32>
    %91 = vector.multi_reduction <add>, %90, %cst_27 [1] : vector<8x8xf32> to vector<8xf32>
    %92 = vector.shape_cast %91 : vector<8xf32> to vector<8x1xf32>
    %93 = tpu.reciprocal %92 {approx = true} : vector<8x1xf32> -> vector<8x1xf32>
    %94 = vector.broadcast %93 : vector<8x1xf32> to vector<8x8xf32>
    %95 = arith.mulf %90, %94 : vector<8x8xf32>
    %96 = arith.truncf %95 : vector<8x8xf32> to vector<8x8xbf16>
    %cst_28 = arith.constant dense<0.000000e+00> : vector<8x8xf32>
    %97 = tpu.matmul %96, %83, %cst_28 {dimension_numbers = #tpu.dot_dimension_numbers<[1], [0], [0], [1], [0, 0, 1, 1], [], []>} : vector<8x8xbf16>, vector<8x8xbf16>, vector<8x8xf32> -> vector<8x8xf32>
    %98 = tpu.concatenate %37, %57, %77, %97 in 1 : vector<8x8xf32>, vector<8x8xf32>, vector<8x8xf32>, vector<8x8xf32> -> vector<8x32xf32>
    %99 = arith.truncf %98 : vector<8x32xf32> to vector<8x32xbf16>
    %cst_29 = arith.constant dense<0.000000e+00> : vector<8x32xf32>
    %100 = tpu.matmul %99, %1, %cst_29 {dimension_numbers = #tpu.dot_dimension_numbers<[1], [0], [0], [1], [0, 0, 1, 1], [], []>} : vector<8x32xbf16>, vector<32x32xbf16>, vector<8x32xf32> -> vector<8x32xf32>
    %c0_30 = arith.constant 0 : index
    %c0_31 = arith.constant 0 : index
    %101 = vector.load %arg5[%c0_30, %c0_31] : memref<1x32xf32, #tpu.memory_space<vmem>>, vector<1x32xf32>
    %102 = vector.broadcast %101 : vector<1x32xf32> to vector<8x32xf32>
    %103 = arith.addf %100, %102 : vector<8x32xf32>
    %104 = arith.addf %103, %3 : vector<8x32xf32>
    %c0_32 = arith.constant 0 : index
    %c0_33 = arith.constant 0 : index
    %105 = vector.load %arg6[%c0_32, %c0_33] : memref<1x32xf32, #tpu.memory_space<vmem>>, vector<1x32xf32>
    %c0_34 = arith.constant 0 : index
    %c0_35 = arith.constant 0 : index
    %106 = vector.load %arg7[%c0_34, %c0_35] : memref<1x32xf32, #tpu.memory_space<vmem>>, vector<1x32xf32>
    %cst_36 = arith.constant dense<0.000000e+00> : vector<8xf32>
    %107 = vector.multi_reduction <add>, %104, %cst_36 [1] : vector<8x32xf32> to vector<8xf32>
    %108 = vector.shape_cast %107 : vector<8xf32> to vector<8x1xf32>
    %cst_37 = arith.constant 3.200000e+01 : f32
    %109 = vector.broadcast %cst_37 : f32 to vector<8x1xf32>
    %110 = arith.divf %108, %109 : vector<8x1xf32>
    %111 = vector.broadcast %110 : vector<8x1xf32> to vector<8x32xf32>
    %112 = arith.subf %104, %111 : vector<8x32xf32>
    %113 = arith.mulf %112, %112 : vector<8x32xf32>
    %cst_38 = arith.constant dense<0.000000e+00> : vector<8xf32>
    %114 = vector.multi_reduction <add>, %113, %cst_38 [1] : vector<8x32xf32> to vector<8xf32>
    %115 = vector.shape_cast %114 : vector<8xf32> to vector<8x1xf32>
    %cst_39 = arith.constant 3.200000e+01 : f32
    %116 = vector.broadcast %cst_39 : f32 to vector<8x1xf32>
    %117 = arith.divf %115, %116 : vector<8x1xf32>
    %cst_40 = arith.constant 9.99999974E-6 : f32
    %118 = vector.broadcast %cst_40 : f32 to vector<8x1xf32>
    %119 = arith.addf %117, %118 : vector<8x1xf32>
    %120 = math.rsqrt %119 : vector<8x1xf32>
    %121 = vector.broadcast %120 : vector<8x1xf32> to vector<8x32xf32>
    %122 = arith.mulf %112, %121 : vector<8x32xf32>
    %123 = vector.broadcast %105 : vector<1x32xf32> to vector<8x32xf32>
    %124 = arith.mulf %122, %123 : vector<8x32xf32>
    %125 = vector.broadcast %106 : vector<1x32xf32> to vector<8x32xf32>
    %126 = arith.addf %124, %125 : vector<8x32xf32>
    %127 = arith.truncf %126 : vector<8x32xf32> to vector<8x32xbf16>
    %c0_41 = arith.constant 0 : index
    %c0_42 = arith.constant 0 : index
    %c0_43 = arith.constant 0 : index
    %128 = vector.load %arg8[%c0_41, %c0_42, %c0_43] : memref<1x8x32xbf16, #tpu.memory_space<vmem>>, vector<1x8x32xbf16>
    %129 = vector.shape_cast %128 : vector<1x8x32xbf16> to vector<8x32xbf16>
    %130 = vector.shape_cast %127 : vector<8x32xbf16> to vector<1x8x32xbf16>
    tpu.vector_store %arg8[%c0_41, %c0_42, %c0_43], %130 {strides = array<i32>} : memref<1x8x32xbf16, #tpu.memory_space<vmem>>, vector<1x8x32xbf16>,
    return
  }
  func.func @transform_0(%arg0: i32) -> (i32, i32, i32) {
    %c0_i32 = arith.constant 0 : i32
    %c0_i32_0 = arith.constant 0 : i32
    %c0_i32_1 = arith.constant 0 : i32
    return %arg0, %c0_i32, %c0_i32_0 : i32, i32, i32
  }
  func.func @transform_1(%arg0: i32) -> (i32, i32, i32) {
    %c0_i32 = arith.constant 0 : i32
    %c0_i32_0 = arith.constant 0 : i32
    %c0_i32_1 = arith.constant 0 : i32
    return %arg0, %c0_i32, %c0_i32_0 : i32, i32, i32
  }
  func.func @transform_2(%arg0: i32) -> (i32, i32) {
    %c0_i32 = arith.constant 0 : i32
    %c0_i32_0 = arith.constant 0 : i32
    %c0_i32_1 = arith.constant 0 : i32
    return %c0_i32, %c0_i32_0 : i32, i32
  }
  func.func @transform_3(%arg0: i32) -> (i32, i32) {
    %c0_i32 = arith.constant 0 : i32
    %c0_i32_0 = arith.constant 0 : i32
    %c0_i32_1 = arith.constant 0 : i32
    return %c0_i32, %c0_i32_0 : i32, i32
  }
  func.func @transform_4(%arg0: i32) -> (i32, i32) {
    %c0_i32 = arith.constant 0 : i32
    %c0_i32_0 = arith.constant 0 : i32
    %c0_i32_1 = arith.constant 0 : i32
    return %c0_i32, %c0_i32_0 : i32, i32
  }
  func.func @transform_5(%arg0: i32) -> (i32, i32) {
    %c0_i32 = arith.constant 0 : i32
    %c0_i32_0 = arith.constant 0 : i32
    %c0_i32_1 = arith.constant 0 : i32
    return %c0_i32, %c0_i32_0 : i32, i32
  }
  func.func @transform_6(%arg0: i32) -> (i32, i32) {
    %c0_i32 = arith.constant 0 : i32
    %c0_i32_0 = arith.constant 0 : i32
    %c0_i32_1 = arith.constant 0 : i32
    return %c0_i32, %c0_i32_0 : i32, i32
  }
  func.func @transform_7(%arg0: i32) -> (i32, i32, i32) {
    %c0_i32 = arith.constant 0 : i32
    %c0_i32_0 = arith.constant 0 : i32
    %c0_i32_1 = arith.constant 0 : i32
    return %arg0, %c0_i32, %c0_i32_0 : i32, i32, i32
  }
}

module attributes {stable_mosaic.version = 11 : i64} {
  func.func @_attn_block_kernel(%arg0: i32, %arg1: memref<1x8x32xf32, #tpu.memory_space<vmem>>, %arg2: memref<1x8x32xf32, #tpu.memory_space<vmem>>, %arg3: memref<1x8x32xbf16, #tpu.memory_space<vmem>>, %arg4: memref<1x1x8xf32, #tpu.memory_space<vmem>>, %arg5: memref<32x96xbf16, #tpu.memory_space<vmem>>, %arg6: memref<32x32xbf16, #tpu.memory_space<vmem>>, %arg7: memref<1x32xf32, #tpu.memory_space<vmem>>, %arg8: memref<1x32xf32, #tpu.memory_space<vmem>>, %arg9: memref<1x32xf32, #tpu.memory_space<vmem>>, %arg10: memref<1x8x32xbf16, #tpu.memory_space<vmem>>) attributes {dimension_semantics = [#tpu.dimension_semantics<parallel>], iteration_bounds = array<i64: 2>, scalar_prefetch = 0 : i64, scratch_operands = 0 : i64, tpu.core_type = #tpu.core_type<tc>, window_params = [{transform_indices = @transform_0, window_bounds = array<i64: 1, 8, 32>}, {transform_indices = @transform_1, window_bounds = array<i64: 1, 8, 32>}, {transform_indices = @transform_2, window_bounds = array<i64: 1, 8, 32>}, {transform_indices = @transform_3, window_bounds = array<i64: 1, 1, 8>}, {pipeline_mode = #tpu.pipeline_mode<synchronous>, transform_indices = @transform_4, window_bounds = array<i64: 32, 96>}, {pipeline_mode = #tpu.pipeline_mode<synchronous>, transform_indices = @transform_5, window_bounds = array<i64: 32, 32>}, {pipeline_mode = #tpu.pipeline_mode<synchronous>, transform_indices = @transform_6, window_bounds = array<i64: 1, 32>}, {pipeline_mode = #tpu.pipeline_mode<synchronous>, transform_indices = @transform_7, window_bounds = array<i64: 1, 32>}, {pipeline_mode = #tpu.pipeline_mode<synchronous>, transform_indices = @transform_8, window_bounds = array<i64: 1, 32>}, {transform_indices = @transform_9, window_bounds = array<i64: 1, 8, 32>}]} {
    %c0 = arith.constant 0 : index
    %c0_0 = arith.constant 0 : index
    %0 = vector.load %arg5[%c0, %c0_0] : memref<32x96xbf16, #tpu.memory_space<vmem>>, vector<32x96xbf16>
    %c0_1 = arith.constant 0 : index
    %c0_2 = arith.constant 0 : index
    %1 = vector.load %arg6[%c0_1, %c0_2] : memref<32x32xbf16, #tpu.memory_space<vmem>>, vector<32x32xbf16>
    %c0_3 = arith.constant 0 : index
    %c0_4 = arith.constant 0 : index
    %c0_5 = arith.constant 0 : index
    %2 = vector.load %arg3[%c0_3, %c0_4, %c0_5] : memref<1x8x32xbf16, #tpu.memory_space<vmem>>, vector<1x8x32xbf16>
    %3 = vector.shape_cast %2 : vector<1x8x32xbf16> to vector<8x32xbf16>
    %4 = arith.extf %3 : vector<8x32xbf16> to vector<8x32xf32>
    %5 = arith.truncf %4 : vector<8x32xf32> to vector<8x32xbf16>
    %6 = vector.extract_strided_slice %0 {offsets = [0, 0], sizes = [32, 32], strides = [1, 1]} : vector<32x96xbf16> to vector<32x32xbf16>
    %cst = arith.constant dense<0.000000e+00> : vector<8x32xf32>
    %7 = tpu.matmul %5, %6, %cst {dimension_numbers = #tpu.dot_dimension_numbers<[1], [0], [0], [1], [0, 0, 1, 1], [], []>} : vector<8x32xbf16>, vector<32x32xbf16>, vector<8x32xf32> -> vector<8x32xf32>
    %c0_6 = arith.constant 0 : index
    %c0_7 = arith.constant 0 : index
    %c0_8 = arith.constant 0 : index
    %8 = vector.load %arg2[%c0_6, %c0_7, %c0_8] : memref<1x8x32xf32, #tpu.memory_space<vmem>>, vector<1x8x32xf32>
    %9 = vector.shape_cast %8 : vector<1x8x32xf32> to vector<8x32xf32>
    %10 = arith.truncf %9 : vector<8x32xf32> to vector<8x32xbf16>
    %11 = vector.extract_strided_slice %0 {offsets = [0, 32], sizes = [32, 32], strides = [1, 1]} : vector<32x96xbf16> to vector<32x32xbf16>
    %cst_9 = arith.constant dense<0.000000e+00> : vector<8x32xf32>
    %12 = tpu.matmul %10, %11, %cst_9 {dimension_numbers = #tpu.dot_dimension_numbers<[1], [0], [0], [1], [0, 0, 1, 1], [], []>} : vector<8x32xbf16>, vector<32x32xbf16>, vector<8x32xf32> -> vector<8x32xf32>
    %c0_10 = arith.constant 0 : index
    %c0_11 = arith.constant 0 : index
    %c0_12 = arith.constant 0 : index
    %13 = vector.load %arg1[%c0_10, %c0_11, %c0_12] : memref<1x8x32xf32, #tpu.memory_space<vmem>>, vector<1x8x32xf32>
    %14 = vector.shape_cast %13 : vector<1x8x32xf32> to vector<8x32xf32>
    %15 = arith.truncf %14 : vector<8x32xf32> to vector<8x32xbf16>
    %16 = vector.extract_strided_slice %0 {offsets = [0, 64], sizes = [32, 32], strides = [1, 1]} : vector<32x96xbf16> to vector<32x32xbf16>
    %cst_13 = arith.constant dense<0.000000e+00> : vector<8x32xf32>
    %17 = tpu.matmul %15, %16, %cst_13 {dimension_numbers = #tpu.dot_dimension_numbers<[1], [0], [0], [1], [0, 0, 1, 1], [], []>} : vector<8x32xbf16>, vector<32x32xbf16>, vector<8x32xf32> -> vector<8x32xf32>
    %cst_14 = arith.constant 0.176776692 : f32
    %18 = vector.broadcast %cst_14 : f32 to vector<8x32xf32>
    %19 = arith.mulf %7, %18 : vector<8x32xf32>
    %c0_15 = arith.constant 0 : index
    %c0_16 = arith.constant 0 : index
    %c0_17 = arith.constant 0 : index
    %20 = vector.load %arg4[%c0_15, %c0_16, %c0_17] : memref<1x1x8xf32, #tpu.memory_space<vmem>>, vector<1x1x8xf32>
    %21 = vector.shape_cast %20 : vector<1x1x8xf32> to vector<1x8xf32>
    %cst_18 = arith.constant 0.000000e+00 : f32
    %22 = vector.broadcast %cst_18 : f32 to vector<1x8xf32>
    %23 = arith.cmpf oeq, %21, %22 : vector<1x8xf32>
    %cst_19 = arith.constant -1.000000e+30 : f32
    %cst_20 = arith.constant 0.000000e+00 : f32
    %24 = vector.broadcast %cst_19 : f32 to vector<1x8xf32>
    %25 = vector.broadcast %cst_20 : f32 to vector<1x8xf32>
    %26 = arith.select %23, %24, %25 : vector<1x8xi1>, vector<1x8xf32>
    %27 = vector.extract_strided_slice %19 {offsets = [0, 0], sizes = [8, 8], strides = [1, 1]} : vector<8x32xf32> to vector<8x8xf32>
    %28 = arith.truncf %27 : vector<8x8xf32> to vector<8x8xbf16>
    %29 = vector.extract_strided_slice %12 {offsets = [0, 0], sizes = [8, 8], strides = [1, 1]} : vector<8x32xf32> to vector<8x8xf32>
    %30 = arith.truncf %29 : vector<8x8xf32> to vector<8x8xbf16>
    %31 = vector.extract_strided_slice %17 {offsets = [0, 0], sizes = [8, 8], strides = [1, 1]} : vector<8x32xf32> to vector<8x8xf32>
    %32 = arith.truncf %31 : vector<8x8xf32> to vector<8x8xbf16>
    %cst_21 = arith.constant dense<0.000000e+00> : vector<8x8xf32>
    %33 = tpu.matmul %28, %30, %cst_21 {dimension_numbers = #tpu.dot_dimension_numbers<[1], [1], [0], [0], [0, 0, 1, 0], [], []>} : vector<8x8xbf16>, vector<8x8xbf16>, vector<8x8xf32> -> vector<8x8xf32>
    %34 = vector.broadcast %26 : vector<1x8xf32> to vector<8x8xf32>
    %35 = arith.addf %33, %34 : vector<8x8xf32>
    %cst_22 = arith.constant dense<0xFF800000> : vector<8xf32>
    %36 = vector.multi_reduction <maximumf>, %35, %cst_22 [1] : vector<8x8xf32> to vector<8xf32>
    %37 = vector.shape_cast %36 : vector<8xf32> to vector<8x1xf32>
    %38 = vector.broadcast %37 : vector<8x1xf32> to vector<8x8xf32>
    %39 = arith.subf %35, %38 : vector<8x8xf32>
    %40 = math.exp %39 : vector<8x8xf32>
    %cst_23 = arith.constant dense<0.000000e+00> : vector<8xf32>
    %41 = vector.multi_reduction <add>, %40, %cst_23 [1] : vector<8x8xf32> to vector<8xf32>
    %42 = vector.shape_cast %41 : vector<8xf32> to vector<8x1xf32>
    %43 = tpu.reciprocal %42 {approx = true} : vector<8x1xf32> -> vector<8x1xf32>
    %44 = vector.broadcast %43 : vector<8x1xf32> to vector<8x8xf32>
    %45 = arith.mulf %40, %44 : vector<8x8xf32>
    %46 = arith.truncf %45 : vector<8x8xf32> to vector<8x8xbf16>
    %cst_24 = arith.constant dense<0.000000e+00> : vector<8x8xf32>
    %47 = tpu.matmul %46, %32, %cst_24 {dimension_numbers = #tpu.dot_dimension_numbers<[1], [0], [0], [1], [0, 0, 1, 1], [], []>} : vector<8x8xbf16>, vector<8x8xbf16>, vector<8x8xf32> -> vector<8x8xf32>
    %48 = vector.extract_strided_slice %19 {offsets = [0, 8], sizes = [8, 8], strides = [1, 1]} : vector<8x32xf32> to vector<8x8xf32>
    %49 = arith.truncf %48 : vector<8x8xf32> to vector<8x8xbf16>
    %50 = vector.extract_strided_slice %12 {offsets = [0, 8], sizes = [8, 8], strides = [1, 1]} : vector<8x32xf32> to vector<8x8xf32>
    %51 = arith.truncf %50 : vector<8x8xf32> to vector<8x8xbf16>
    %52 = vector.extract_strided_slice %17 {offsets = [0, 8], sizes = [8, 8], strides = [1, 1]} : vector<8x32xf32> to vector<8x8xf32>
    %53 = arith.truncf %52 : vector<8x8xf32> to vector<8x8xbf16>
    %cst_25 = arith.constant dense<0.000000e+00> : vector<8x8xf32>
    %54 = tpu.matmul %49, %51, %cst_25 {dimension_numbers = #tpu.dot_dimension_numbers<[1], [1], [0], [0], [0, 0, 1, 0], [], []>} : vector<8x8xbf16>, vector<8x8xbf16>, vector<8x8xf32> -> vector<8x8xf32>
    %55 = vector.broadcast %26 : vector<1x8xf32> to vector<8x8xf32>
    %56 = arith.addf %54, %55 : vector<8x8xf32>
    %cst_26 = arith.constant dense<0xFF800000> : vector<8xf32>
    %57 = vector.multi_reduction <maximumf>, %56, %cst_26 [1] : vector<8x8xf32> to vector<8xf32>
    %58 = vector.shape_cast %57 : vector<8xf32> to vector<8x1xf32>
    %59 = vector.broadcast %58 : vector<8x1xf32> to vector<8x8xf32>
    %60 = arith.subf %56, %59 : vector<8x8xf32>
    %61 = math.exp %60 : vector<8x8xf32>
    %cst_27 = arith.constant dense<0.000000e+00> : vector<8xf32>
    %62 = vector.multi_reduction <add>, %61, %cst_27 [1] : vector<8x8xf32> to vector<8xf32>
    %63 = vector.shape_cast %62 : vector<8xf32> to vector<8x1xf32>
    %64 = tpu.reciprocal %63 {approx = true} : vector<8x1xf32> -> vector<8x1xf32>
    %65 = vector.broadcast %64 : vector<8x1xf32> to vector<8x8xf32>
    %66 = arith.mulf %61, %65 : vector<8x8xf32>
    %67 = arith.truncf %66 : vector<8x8xf32> to vector<8x8xbf16>
    %cst_28 = arith.constant dense<0.000000e+00> : vector<8x8xf32>
    %68 = tpu.matmul %67, %53, %cst_28 {dimension_numbers = #tpu.dot_dimension_numbers<[1], [0], [0], [1], [0, 0, 1, 1], [], []>} : vector<8x8xbf16>, vector<8x8xbf16>, vector<8x8xf32> -> vector<8x8xf32>
    %69 = vector.extract_strided_slice %19 {offsets = [0, 16], sizes = [8, 8], strides = [1, 1]} : vector<8x32xf32> to vector<8x8xf32>
    %70 = arith.truncf %69 : vector<8x8xf32> to vector<8x8xbf16>
    %71 = vector.extract_strided_slice %12 {offsets = [0, 16], sizes = [8, 8], strides = [1, 1]} : vector<8x32xf32> to vector<8x8xf32>
    %72 = arith.truncf %71 : vector<8x8xf32> to vector<8x8xbf16>
    %73 = vector.extract_strided_slice %17 {offsets = [0, 16], sizes = [8, 8], strides = [1, 1]} : vector<8x32xf32> to vector<8x8xf32>
    %74 = arith.truncf %73 : vector<8x8xf32> to vector<8x8xbf16>
    %cst_29 = arith.constant dense<0.000000e+00> : vector<8x8xf32>
    %75 = tpu.matmul %70, %72, %cst_29 {dimension_numbers = #tpu.dot_dimension_numbers<[1], [1], [0], [0], [0, 0, 1, 0], [], []>} : vector<8x8xbf16>, vector<8x8xbf16>, vector<8x8xf32> -> vector<8x8xf32>
    %76 = vector.broadcast %26 : vector<1x8xf32> to vector<8x8xf32>
    %77 = arith.addf %75, %76 : vector<8x8xf32>
    %cst_30 = arith.constant dense<0xFF800000> : vector<8xf32>
    %78 = vector.multi_reduction <maximumf>, %77, %cst_30 [1] : vector<8x8xf32> to vector<8xf32>
    %79 = vector.shape_cast %78 : vector<8xf32> to vector<8x1xf32>
    %80 = vector.broadcast %79 : vector<8x1xf32> to vector<8x8xf32>
    %81 = arith.subf %77, %80 : vector<8x8xf32>
    %82 = math.exp %81 : vector<8x8xf32>
    %cst_31 = arith.constant dense<0.000000e+00> : vector<8xf32>
    %83 = vector.multi_reduction <add>, %82, %cst_31 [1] : vector<8x8xf32> to vector<8xf32>
    %84 = vector.shape_cast %83 : vector<8xf32> to vector<8x1xf32>
    %85 = tpu.reciprocal %84 {approx = true} : vector<8x1xf32> -> vector<8x1xf32>
    %86 = vector.broadcast %85 : vector<8x1xf32> to vector<8x8xf32>
    %87 = arith.mulf %82, %86 : vector<8x8xf32>
    %88 = arith.truncf %87 : vector<8x8xf32> to vector<8x8xbf16>
    %cst_32 = arith.constant dense<0.000000e+00> : vector<8x8xf32>
    %89 = tpu.matmul %88, %74, %cst_32 {dimension_numbers = #tpu.dot_dimension_numbers<[1], [0], [0], [1], [0, 0, 1, 1], [], []>} : vector<8x8xbf16>, vector<8x8xbf16>, vector<8x8xf32> -> vector<8x8xf32>
    %90 = vector.extract_strided_slice %19 {offsets = [0, 24], sizes = [8, 8], strides = [1, 1]} : vector<8x32xf32> to vector<8x8xf32>
    %91 = arith.truncf %90 : vector<8x8xf32> to vector<8x8xbf16>
    %92 = vector.extract_strided_slice %12 {offsets = [0, 24], sizes = [8, 8], strides = [1, 1]} : vector<8x32xf32> to vector<8x8xf32>
    %93 = arith.truncf %92 : vector<8x8xf32> to vector<8x8xbf16>
    %94 = vector.extract_strided_slice %17 {offsets = [0, 24], sizes = [8, 8], strides = [1, 1]} : vector<8x32xf32> to vector<8x8xf32>
    %95 = arith.truncf %94 : vector<8x8xf32> to vector<8x8xbf16>
    %cst_33 = arith.constant dense<0.000000e+00> : vector<8x8xf32>
    %96 = tpu.matmul %91, %93, %cst_33 {dimension_numbers = #tpu.dot_dimension_numbers<[1], [1], [0], [0], [0, 0, 1, 0], [], []>} : vector<8x8xbf16>, vector<8x8xbf16>, vector<8x8xf32> -> vector<8x8xf32>
    %97 = vector.broadcast %26 : vector<1x8xf32> to vector<8x8xf32>
    %98 = arith.addf %96, %97 : vector<8x8xf32>
    %cst_34 = arith.constant dense<0xFF800000> : vector<8xf32>
    %99 = vector.multi_reduction <maximumf>, %98, %cst_34 [1] : vector<8x8xf32> to vector<8xf32>
    %100 = vector.shape_cast %99 : vector<8xf32> to vector<8x1xf32>
    %101 = vector.broadcast %100 : vector<8x1xf32> to vector<8x8xf32>
    %102 = arith.subf %98, %101 : vector<8x8xf32>
    %103 = math.exp %102 : vector<8x8xf32>
    %cst_35 = arith.constant dense<0.000000e+00> : vector<8xf32>
    %104 = vector.multi_reduction <add>, %103, %cst_35 [1] : vector<8x8xf32> to vector<8xf32>
    %105 = vector.shape_cast %104 : vector<8xf32> to vector<8x1xf32>
    %106 = tpu.reciprocal %105 {approx = true} : vector<8x1xf32> -> vector<8x1xf32>
    %107 = vector.broadcast %106 : vector<8x1xf32> to vector<8x8xf32>
    %108 = arith.mulf %103, %107 : vector<8x8xf32>
    %109 = arith.truncf %108 : vector<8x8xf32> to vector<8x8xbf16>
    %cst_36 = arith.constant dense<0.000000e+00> : vector<8x8xf32>
    %110 = tpu.matmul %109, %95, %cst_36 {dimension_numbers = #tpu.dot_dimension_numbers<[1], [0], [0], [1], [0, 0, 1, 1], [], []>} : vector<8x8xbf16>, vector<8x8xbf16>, vector<8x8xf32> -> vector<8x8xf32>
    %111 = tpu.concatenate %47, %68, %89, %110 in 1 : vector<8x8xf32>, vector<8x8xf32>, vector<8x8xf32>, vector<8x8xf32> -> vector<8x32xf32>
    %112 = arith.truncf %111 : vector<8x32xf32> to vector<8x32xbf16>
    %cst_37 = arith.constant dense<0.000000e+00> : vector<8x32xf32>
    %113 = tpu.matmul %112, %1, %cst_37 {dimension_numbers = #tpu.dot_dimension_numbers<[1], [0], [0], [1], [0, 0, 1, 1], [], []>} : vector<8x32xbf16>, vector<32x32xbf16>, vector<8x32xf32> -> vector<8x32xf32>
    %c0_38 = arith.constant 0 : index
    %c0_39 = arith.constant 0 : index
    %114 = vector.load %arg7[%c0_38, %c0_39] : memref<1x32xf32, #tpu.memory_space<vmem>>, vector<1x32xf32>
    %115 = vector.broadcast %114 : vector<1x32xf32> to vector<8x32xf32>
    %116 = arith.addf %113, %115 : vector<8x32xf32>
    %117 = arith.addf %116, %4 : vector<8x32xf32>
    %c0_40 = arith.constant 0 : index
    %c0_41 = arith.constant 0 : index
    %118 = vector.load %arg8[%c0_40, %c0_41] : memref<1x32xf32, #tpu.memory_space<vmem>>, vector<1x32xf32>
    %c0_42 = arith.constant 0 : index
    %c0_43 = arith.constant 0 : index
    %119 = vector.load %arg9[%c0_42, %c0_43] : memref<1x32xf32, #tpu.memory_space<vmem>>, vector<1x32xf32>
    %cst_44 = arith.constant dense<0.000000e+00> : vector<8xf32>
    %120 = vector.multi_reduction <add>, %117, %cst_44 [1] : vector<8x32xf32> to vector<8xf32>
    %121 = vector.shape_cast %120 : vector<8xf32> to vector<8x1xf32>
    %cst_45 = arith.constant 3.200000e+01 : f32
    %122 = vector.broadcast %cst_45 : f32 to vector<8x1xf32>
    %123 = arith.divf %121, %122 : vector<8x1xf32>
    %124 = vector.broadcast %123 : vector<8x1xf32> to vector<8x32xf32>
    %125 = arith.subf %117, %124 : vector<8x32xf32>
    %126 = arith.mulf %125, %125 : vector<8x32xf32>
    %cst_46 = arith.constant dense<0.000000e+00> : vector<8xf32>
    %127 = vector.multi_reduction <add>, %126, %cst_46 [1] : vector<8x32xf32> to vector<8xf32>
    %128 = vector.shape_cast %127 : vector<8xf32> to vector<8x1xf32>
    %cst_47 = arith.constant 3.200000e+01 : f32
    %129 = vector.broadcast %cst_47 : f32 to vector<8x1xf32>
    %130 = arith.divf %128, %129 : vector<8x1xf32>
    %cst_48 = arith.constant 9.99999974E-6 : f32
    %131 = vector.broadcast %cst_48 : f32 to vector<8x1xf32>
    %132 = arith.addf %130, %131 : vector<8x1xf32>
    %133 = math.rsqrt %132 : vector<8x1xf32>
    %134 = vector.broadcast %133 : vector<8x1xf32> to vector<8x32xf32>
    %135 = arith.mulf %125, %134 : vector<8x32xf32>
    %136 = vector.broadcast %118 : vector<1x32xf32> to vector<8x32xf32>
    %137 = arith.mulf %135, %136 : vector<8x32xf32>
    %138 = vector.broadcast %119 : vector<1x32xf32> to vector<8x32xf32>
    %139 = arith.addf %137, %138 : vector<8x32xf32>
    %140 = arith.truncf %139 : vector<8x32xf32> to vector<8x32xbf16>
    %c0_49 = arith.constant 0 : index
    %c0_50 = arith.constant 0 : index
    %c0_51 = arith.constant 0 : index
    %141 = vector.load %arg10[%c0_49, %c0_50, %c0_51] : memref<1x8x32xbf16, #tpu.memory_space<vmem>>, vector<1x8x32xbf16>
    %142 = vector.shape_cast %141 : vector<1x8x32xbf16> to vector<8x32xbf16>
    %143 = vector.shape_cast %140 : vector<8x32xbf16> to vector<1x8x32xbf16>
    tpu.vector_store %arg10[%c0_49, %c0_50, %c0_51], %143 {strides = array<i32>} : memref<1x8x32xbf16, #tpu.memory_space<vmem>>, vector<1x8x32xbf16>,
    return
  }
  func.func @transform_0(%arg0: i32) -> (i32, i32, i32) {
    %c0_i32 = arith.constant 0 : i32
    %c0_i32_0 = arith.constant 0 : i32
    %c0_i32_1 = arith.constant 0 : i32
    return %arg0, %c0_i32, %c0_i32_0 : i32, i32, i32
  }
  func.func @transform_1(%arg0: i32) -> (i32, i32, i32) {
    %c0_i32 = arith.constant 0 : i32
    %c0_i32_0 = arith.constant 0 : i32
    %c0_i32_1 = arith.constant 0 : i32
    return %arg0, %c0_i32, %c0_i32_0 : i32, i32, i32
  }
  func.func @transform_2(%arg0: i32) -> (i32, i32, i32) {
    %c0_i32 = arith.constant 0 : i32
    %c0_i32_0 = arith.constant 0 : i32
    %c0_i32_1 = arith.constant 0 : i32
    return %arg0, %c0_i32, %c0_i32_0 : i32, i32, i32
  }
  func.func @transform_3(%arg0: i32) -> (i32, i32, i32) {
    %c0_i32 = arith.constant 0 : i32
    %c0_i32_0 = arith.constant 0 : i32
    %c0_i32_1 = arith.constant 0 : i32
    return %arg0, %c0_i32, %c0_i32_0 : i32, i32, i32
  }
  func.func @transform_4(%arg0: i32) -> (i32, i32) {
    %c0_i32 = arith.constant 0 : i32
    %c0_i32_0 = arith.constant 0 : i32
    %c0_i32_1 = arith.constant 0 : i32
    return %c0_i32, %c0_i32_0 : i32, i32
  }
  func.func @transform_5(%arg0: i32) -> (i32, i32) {
    %c0_i32 = arith.constant 0 : i32
    %c0_i32_0 = arith.constant 0 : i32
    %c0_i32_1 = arith.constant 0 : i32
    return %c0_i32, %c0_i32_0 : i32, i32
  }
  func.func @transform_6(%arg0: i32) -> (i32, i32) {
    %c0_i32 = arith.constant 0 : i32
    %c0_i32_0 = arith.constant 0 : i32
    %c0_i32_1 = arith.constant 0 : i32
    return %c0_i32, %c0_i32_0 : i32, i32
  }
  func.func @transform_7(%arg0: i32) -> (i32, i32) {
    %c0_i32 = arith.constant 0 : i32
    %c0_i32_0 = arith.constant 0 : i32
    %c0_i32_1 = arith.constant 0 : i32
    return %c0_i32, %c0_i32_0 : i32, i32
  }
  func.func @transform_8(%arg0: i32) -> (i32, i32) {
    %c0_i32 = arith.constant 0 : i32
    %c0_i32_0 = arith.constant 0 : i32
    %c0_i32_1 = arith.constant 0 : i32
    return %c0_i32, %c0_i32_0 : i32, i32
  }
  func.func @transform_9(%arg0: i32) -> (i32, i32, i32) {
    %c0_i32 = arith.constant 0 : i32
    %c0_i32_0 = arith.constant 0 : i32
    %c0_i32_1 = arith.constant 0 : i32
    return %arg0, %c0_i32, %c0_i32_0 : i32, i32, i32
  }
}

</mosaic_0001>

<bundles_post_ra>
// kernel: decoder_block_forward.5
= control target key start
LH: loop header
LB: loop body
LE: loop exit
PB: predicated region body
PF: predicated region fallthrough
CT: control target
= control target key end

     0   :  { %v409_v1 = vmov 0.0   ;;  %vm410_vm0 = vmmov 0   ;;  %vm32_vm1 = vcmask 261120   ;;  %s516_s0 = inlined_call_operand.vmem [shape: bf16[16,32], index: 0, kind: input, shape index: {}]   ;;  %s517_s1 = inlined_call_operand.vmem [shape: bf16[32,128], index: 1, kind: input, shape index: {}]   ;;  %s518_s2 = inlined_call_operand.vmem [shape: f32[1,128], index: 2, kind: input, shape index: {}]   ;;  %s519_s3 = inlined_call_operand.vmem [shape: bf16[128,32], index: 3, kind: input, shape index: {}]   ;;  %s520_s4 = inlined_call_operand.vmem [shape: f32[1,32], index: 4, kind: input, shape index: {}]   ;;  %s521_s5 = inlined_call_operand.vmem [shape: f32[1,32], index: 5, kind: input, shape index: {}]   ;;  %s522_s6 = inlined_call_operand.vmem [shape: f32[1,32], index: 6, kind: input, shape index: {}]   ;;  %s523_s7 = inlined_call_operand.hbm [shape: f32[16,32], index: 7, kind: output, shape index: {}]  }
   0x1   :  { %v372_v0 = vld [vmem:[%s517_s1 + $0x8] sm:$0xff]   ;;  %339 = vmatprep.subr.bf16.mxu0 %v409_v1  ;;  %347 = vmatprep.subr.bf16.mxu1 %v409_v1  ;;  %v373_v2 = vld [vmem:[%s517_s1] sm:$0xff]   ;;  %33 = vst.msk [vmem:[#allocation2] sm:$0xff] %vm32_vm1, %v409_v1  ;;  %34 = vst.msk [vmem:[#allocation2 + $0x8] sm:$0xff] %vm32_vm1, %v409_v1 }
   0x2   :  { %340 = vmatpush3.bf16.msra.mxu0 %v372_v0  ;;  %343 = vmatprep.mubr.msk.bf16.mxu0 %vm410_vm0, %v409_v1  ;;  %v375_v3 = vld [vmem:[%s519_s3 + $0x38] sm:$0xff]   ;;  %v374_v4 = vld [vmem:[%s516_s0] sm:$0xff]   ;;  %v376_v5 = vld [vmem:[%s519_s3 + $0x30] sm:$0xff]  }
   0x3   :  { %341 = vmatprep.subr.bf16.mxu0 %v409_v1  ;;  %363 = vmatprep.mubr.msk.bf16.mxu1 %vm410_vm0, %v409_v1  ;;  %v377_v6 = vld [vmem:[%s519_s3 + $0x28] sm:$0xff]  }
   0x4   :  { %348 = vmatpush3.bf16.msra.mxu1 %v375_v3 }
   0x5   :  { %349 = vmatprep.subr.bf16.mxu1 %v409_v1 }
   0x6   :  { %342 = vmatpush3.bf16.msra.mxu0 %v373_v2 }
   0x8   :  { %350 = vmatpush3.bf16.msra.mxu1 %v376_v5 }
   0x9   :  { %344 = vmatmul.mubr.msk.bf16.vlgmr.msra.gmra.mxu0 %vm32_vm1, %v374_v4  ;;  %351 = vmatprep.subr.bf16.mxu1 %v409_v1 }
   0xa   :  { %12 = vsyncpa [#allocation4], 0  ;;  %v378_v7 = vld [vmem:[%s519_s3 + $0x20] sm:$0xff]   ;;  %v379_v8 = vld [vmem:[%s519_s3 + $0x18] sm:$0xff]   ;;  %s411_s28 = smov [#allocation3]  }
   0xb   :  { %v380_v9 = vld [vmem:[%s519_s3 + $0x10] sm:$0xff]   ;;  %v381_v10 = vld [vmem:[%s519_s3 + $0x8] sm:$0xff]   ;;  %v382_v11 = vld [vmem:[%s519_s3] sm:$0xff]   ;;  %s296_s29 = sshll.u32 %s411_s28, 4  ;;  %s297_s29 = int_to_ptr.vmem [resolvable:$true] %s296_s29 }
   0xc   :  { %352 = vmatpush3.bf16.msra.mxu1 %v377_v6  ;;  %v307_v12 = vld [vmem:[%s518_s2] ss:$0 sm:$0xff]  ;;  %v113_v26 = vld [vmem:[#allocation2 + $0x8] sm:$0xff]  ;;  %s387_s30 = scalar_lea.vmem %s297_s29, 256  ;;  %p392_p1 = scmp.lt.s32.totalorder %s297_s29, %s297_s29 }
   0xd   :  { %353 = vmatprep.subr.bf16.mxu1 %v409_v1  ;;  %v112_v22 = vld [vmem:[#allocation2] sm:$0xff]  ;;  %p388_p0 = scmp.ne.s32.totalorder %s297_s29, %s387_s30  ;;  %p393_p2 = scmp.lt.s32.totalorder %s387_s30, %s387_s30 }
   0xe   :  { %v324_v30 = vld [vmem:[%s516_s0] sm:$0xff]  }
   0xf   :  { %v320_v31 = vld [vmem:[%s520_s4] ss:$0 sm:$0xff]  ;;  %v325_v32 = vunpack.c.l.bf16 %v324_v30  ;;  %v326_v36 = vunpack.c.h.bf16 %v324_v30  ;;  %p394_p3 = por %p393_p2, %p392_p1 }
  0x10   :  { %354 = vmatpush3.bf16.msra.mxu1 %v378_v7  ;;  %v321_v59 = vld [vmem:[%s521_s5] ss:$0 sm:$0xff] }
  0x11   :  { %355 = vmatprep.subr.bf16.mxu1 %v409_v1  ;;  %v322_v61 = vld [vmem:[%s522_s6] ss:$0 sm:$0xff]  ;;  %p395_p4 = pnand %p394_p3, %p388_p0 }
  0x14   :  { %356 = vmatpush3.bf16.msra.mxu1 %v379_v8 }
  0x15   :  { %357 = vmatprep.subr.bf16.mxu1 %v409_v1 }
  0x18   :  { %358 = vmatpush3.bf16.msra.mxu1 %v380_v9 }
  0x19   :  { %359 = vmatprep.subr.bf16.mxu1 %v409_v1 }
  0x1c   :  { %360 = vmatpush3.bf16.msra.mxu1 %v381_v10 }
  0x1d   :  { %361 = vmatprep.subr.bf16.mxu1 %v409_v1 }
  0x20   :  { %362 = vmatpush3.bf16.msra.mxu1 %v382_v11 }
  0xc9   :  { %v103_v13 = vpop.f32.mrf.mxu0 }
  0xca   :  { %v104_v15 = vadd.f32 %v307_v12, %v103_v13 }
  0xcb   :  { %v345_v14 = vpop.f32.mrf.mxu0 }
  0xcc   :  { %v110_v19 = vmax.f32 %v104_v15, 0.0 }
  0xcd   :  { %v106_v16 = vpop.f32.mrf.mxu0 }
  0xce   :  { %v107_v17 = vadd.f32 %v307_v12, %v106_v16 }
  0xcf   :  { %v346_v18 = vpop.f32.mrf.mxu0 }
  0xd0   :  { %v111_v20 = vmax.f32 %v107_v17, 0.0 }
  0xd2   :  { %v114_v21 = vpack.c.bf16 %v111_v20, %v110_v19 }
  0xd4   :  { %364 = vmatmul.mubr.bf16.vlgmr.msra.gmra.mxu1 %v114_v21 }
 0x194   :  { %v213_v23 = vpop.f32.mrf.mxu1 }
 0x195   :  { %v220_v24 = vadd.f32 %v213_v23, %v112_v22 }
 0x196   :  { %v365_v25 = vpop.f32.mrf.mxu1 }
 0x197   :  { %222 = vst.msk [vmem:[#allocation2] sm:$0xff] %vm32_vm1, %v220_v24 }
 0x198   :  { %v216_v27 = vpop.f32.mrf.mxu1 }
 0x199   :  { %v221_v28 = vadd.f32 %v216_v27, %v113_v26 }
 0x19a   :  { %v366_v29 = vpop.f32.mrf.mxu1 }
 0x19b   :  { %223 = vst.msk [vmem:[#allocation2 + $0x8] sm:$0xff] %vm32_vm1, %v221_v28 }
 0x19e   :  { %v227_v33 = vld [vmem:[#allocation2] sm:$0xff] }
 0x19f   :  { %v236_v34 = vadd.f32 %v320_v31, %v227_v33 }
 0x1a1   :  { %v242_v35 = vadd.f32 %v325_v32, %v236_v34 }
 0x1a2   :  { %v228_v37 = vld [vmem:[#allocation2 + $0x8] sm:$0xff] }
 0x1a3   :  { %v246_v38 = vsel %vm32_vm1, %v242_v35, 0.0  ;;  %v237_v39 = vadd.f32 %v320_v31, %v228_v37 }
 0x1a4   :  { %247 = vadd.xlane.f32.xlu0 %v246_v38 }
 0x1a5   :  { %v243_v40 = vadd.f32 %v326_v36, %v237_v39 }
 0x1a7   :  { %v249_v41 = vsel %vm32_vm1, %v243_v40, 0.0 }
 0x1a8   :  { %250 = vadd.xlane.f32.xlu0 %v249_v41 }
 0x22d   :  { %v248_v42 = vpop.xlane.xlu0 %247 }
 0x22e   :  { %v253_v43 = vmul.f32 0.03125, %v248_v42 }
 0x230   :  { %v255_v44 = vsub.f32 %v242_v35, %v253_v43 }
 0x231   :  { %v251_v45 = vpop.xlane.xlu0 %250 }
 0x232   :  { %v254_v46 = vmul.f32 0.03125, %v251_v45  ;;  %v257_v47 = vmul.f32 %v255_v44, %v255_v44 }
 0x234   :  { %v256_v48 = vsub.f32 %v243_v40, %v254_v46  ;;  %v259_v49 = vsel %vm32_vm1, %v257_v47, 0.0 }
 0x235   :  { %260 = vadd.xlane.f32.xlu1 %v259_v49 }
 0x236   :  { %v258_v50 = vmul.f32 %v256_v48, %v256_v48 }
 0x238   :  { %v262_v51 = vsel %vm32_vm1, %v258_v50, 0.0 }
 0x239   :  { %263 = vadd.xlane.f32.xlu1 %v262_v51 }
 0x2be   :  { %v261_v52 = vpop.xlane.xlu1 %260 }
 0x2bf   :  { %v265_v53 = vmul.f32 0.03125, %v261_v52 }
 0x2c1   :  { %v267_v54 = vadd.f32 1e-05, %v265_v53 }
 0x2c2   :  { %v264_v55 = vpop.xlane.xlu1 %263 }
 0x2c3   :  { %383 = vrsqrt.f32 %v267_v54  ;;  %v266_v56 = vmul.f32 0.03125, %v264_v55 }
 0x2c5   :  { %v268_v57 = vadd.f32 1e-05, %v266_v56 }
 0x2c7   :  { %385 = vrsqrt.f32 %v268_v57 }
 0x2d0   :  { %v384_v58 = vpop.eup %383 }
 0x2d1   :  { %v271_v60 = vmul.f32 %v384_v58, %v255_v44 }
 0x2d3   :  { %v279_v62 = vmul.f32 %v321_v59, %v271_v60 }
 0x2d4   :  { %v386_v63 = vpop.eup %385 }
 0x2d5   :  { %v272_v0 = vmul.f32 %v386_v63, %v256_v48  ;;  %v287_v1 = vadd.f32 %v322_v61, %v279_v62 }
 0x2d7   :  { %v280_v2 = vmul.f32 %v321_v59, %v272_v0  ;;  %289 = vst.msk [vmem:[#allocation3] sm:$0xff] %vm32_vm1, %v287_v1 }
 0x2d9   :  { %v288_v3 = vadd.f32 %v322_v61, %v280_v2 }
 0x2db   :  { %290 = vst.msk [vmem:[#allocation3 + $0x8] sm:$0xff] %vm32_vm1, %v288_v3 }
 0x2dc   :  { %398 = shalt.err (!%p395_p4)
}
 0x2dd   :  { %s412_s5 = smov 128   ;;  %s413_s6 = smov 8  }
 0x2de   :  { %302 = dma.vmem_to_hbm [thread:$0]  %s297_s29, 256, %s523_s7, [#allocation4], %s412_s5, %s412_s5, %s413_s6  }
 0x2df   :  { %407 = dma.done.wait [#allocation4], 256  }
 0x2e0   :  { %408 = vsyncadd [#allocation4], 4294967040 }
 0x2e1   :  { %306 = vsyncpa [#allocation4], 1 }

// kernel: decoder_block_forward.3
= control target key start
LH: loop header
LB: loop body
LE: loop exit
PB: predicated region body
PF: predicated region fallthrough
CT: control target
= control target key end

     0   :  { %12 = vsyncpa [#allocation3], 0  ;;  %s1583_s0 = inlined_call_operand.vmem [shape: f32[2,8,32], index: 0, kind: input, shape index: {}]   ;;  %s1584_s1 = inlined_call_operand.vmem [shape: f32[2,8,8], index: 1, kind: input, shape index: {}]   ;;  %s1585_s2 = inlined_call_operand.hbm [shape: bf16[32,96], index: 2, kind: input, shape index: {}]   ;;  %s1586_s3 = inlined_call_operand.hbm [shape: bf16[32,32], index: 3, kind: input, shape index: {}]   ;;  %s1587_s4 = inlined_call_operand.vmem [shape: f32[1,32], index: 4, kind: input, shape index: {}]   ;;  %s1588_s5 = inlined_call_operand.vmem [shape: f32[1,32], index: 5, kind: input, shape index: {}]   ;;  %s1589_s6 = inlined_call_operand.hbm [shape: f32[1,32], index: 6, kind: input, shape index: {}]   ;;  %s1590_s7 = inlined_call_operand.vmem [shape: bf16[2,8,32], index: 7, kind: output, shape index: {}]  }
   0x1   :  { %13 = vsyncpa [#allocation5], 0  ;;  %s1411_s24 = smov 0  }
   0x2 LB: > { %s1417_s25 = sadd.s32 4294967295, %s1348_s24   ;;  %p1060_p0 = scmp.ge.s32.totalorder %s1348_s24, 1  ;;  %s1348_s24 = sphi %s1411_s24, %s19_s24  }
   0x3   : > { %p207_p1 = scmp.lt.s32.totalorder %s1348_s24, 3  ;;  %p1199_p2 = scmp.eq.s32.totalorder %s1417_s25, 0 }
   0x4   : > { %s1350_s27 = smov [#allocation4]   ;;  %s1351_s29 = smov [#allocation2]  }
   0x5   : > { %p1422_p3 = pnand %p1060_p0, %p207_p1  ;;  %s232_s28 = sshll.u32 %s1350_s27, 4  ;;  %s233_s28 = int_to_ptr.vmem [resolvable:$true] %s232_s28 }
   0x6   : > { %s219_s30 = sshll.u32 %s1351_s29, 4  ;;  %s1352_s9 = smov [#allocation6]   ;;  %s220_s30 = int_to_ptr.vmem [resolvable:$true] %s219_s30 }
   0x7   : > { %p1189_p4 = pneg %p1422_p3  ;;  %s252_s10 = sshll.u32 %s1352_s9, 4  ;;  %s1434_s10 = int_to_ptr.vmem [resolvable:$true] %s252_s10 }
   0x8   : > { %s1267_s11 = scalar_lea.vmem %s233_s28, 256  ;;  %p1275_p10 = scmp.lt.s32.totalorder %s233_s28, %s233_s28 }
   0x9   : > { %p1430_p5 = pnand %p1199_p2, %p1189_p4  ;;  %p1268_p7 = scmp.ne.s32.totalorder %s233_s28, %s1267_s11 }
   0xa   : > { %p1276_p11 = scmp.lt.s32.totalorder %s1267_s11, %s1267_s11 }
   0xb   : > { %p1258_p6 = pneg %p1430_p5 }
   0xc   : > { %p1277_p12 = por %p1276_p11, %p1275_p10 }
   0xd   : > { %p1270_p8 = pnand %p1268_p7, %p1258_p6 }
   0xf   : > { %p1271_p9 = pneg %p1270_p8 }
  0x11   : > { %p1278_p13 = pnand %p1277_p12, %p1271_p9 }
  0x13   : > { %1281 = shalt.err (!%p1278_p13)
}
  0x14   : > { %s1353_s12 = smov 64   ;;  %s1354_s13 = smov 4  }
  0x15   : > { %1195 = dma.hbm_to_vmem [thread:$0]  (!%p1430_p5), %s1586_s3, 256, %s233_s28, [#allocation5], %s1353_s12, %s1353_s12, %s1354_s13  }
  0x16   : > { %s1293_s16 = scalar_lea.vmem %s220_s30, 256  ;;  %p1301_p7 = scmp.lt.s32.totalorder %s220_s30, %s220_s30 }
  0x17   : > { %p1294_p0 = scmp.ne.s32.totalorder %s220_s30, %s1293_s16  ;;  %p1302_p8 = scmp.lt.s32.totalorder %s1293_s16, %s1293_s16 }
  0x19   : > { %p1296_p1 = pnand %p1294_p0, %p1258_p6  ;;  %p1303_p10 = por %p1302_p8, %p1301_p7 }
  0x1b   : > { %p1297_p4 = pneg %p1296_p1 }
  0x1d   : > { %p1304_p9 = pnand %p1303_p10, %p1297_p4 }
  0x1f   : > { %1307 = shalt.err (!%p1304_p9)
}
  0x20   : > { %1192 = dma.hbm_to_vmem [thread:$0]  (!%p1430_p5), %s1585_s2, 256, %s220_s30, [#allocation3], %s1353_s12, %s1353_s12, %s1354_s13  }
  0x21   : > { %s1319_s19 = scalar_lea.vmem %s1434_s10, 16  ;;  %s1326_s20 = scalar_lea.vmem %s1434_s10, 32 }
  0x22   : > { %p1320_p11 = scmp.ne.s32.totalorder %s1434_s10, %s1319_s19  ;;  %p1327_p0 = scmp.lt.s32.totalorder %s1434_s10, %s1434_s10 }
  0x23   : > { %p1328_p1 = scmp.lt.s32.totalorder %s1326_s20, %s1319_s19 }
  0x24   : > { %p1322_p12 = pnand %p1320_p11, %p1258_p6 }
  0x25   : > { %p1329_p4 = por %p1328_p1, %p1327_p0 }
  0x26   : > { %p1323_p13 = pneg %p1322_p12 }
  0x28   : > { %p1330_p7 = pnand %p1329_p4, %p1323_p13 }
  0x2a   : > { %1333 = shalt.err (!%p1330_p7)
}
  0x2b   : > { %1198 = dma.hbm_to_vmem [thread:$0]  (!%p1430_p5), %s1589_s6, 16, %s1434_s10, [#allocation5]  }
  0x2c   : > { %279 = sbr.rel (%p1422_p3) target bundleno = 1769 (0x6e9), region = 48 }
  0x31   : > { %1339 = dma.done.wait (%p1199_p2), [#allocation3], 256  }
  0x32   : > { %1341 = vsyncadd (%p1199_p2), [#allocation3], 4294967040 }
  0x33   : > { %1343 = dma.done.wait (%p1199_p2), [#allocation5], 272  }
  0x34   : > { %1345 = vsyncadd (%p1199_p2), [#allocation5], 4294967024  ;;  %p321_p6 = scmp.lt.s32.totalorder %s1417_s25, 1  ;;  %v1355_v0 = vmov 0.0   ;;  %vm1356_vm0 = vmmov 0   ;;  %v1234_v1 = vld [vmem:[#allocation2 + $0x8] sm:$0xff]  }
  0x35   : > { %1113 = vmatprep.subr.bf16.mxu0 %v1355_v0  ;;  %1117 = vmatprep.mubr.msk.bf16.mxu0 %vm1356_vm0, %v1355_v0  ;;  %v1235_v2 = vld [vmem:[#allocation2] sm:$0xff]   ;;  %vm356_vm1 = vcmask 261120   ;;  %s1357_s29 = smov 96   ;;  %s1358_s30 = smov 120   ;;  %vm409_vm2 = vcmask 64512   ;;  %vm473_vm4 = vcmask 1043456  }
  0x36   : > { %s1594_s25 = smov (!%p321_p6, %s1417_s25), 1  ;;  %1121 = vmatprep.subr.bf16.mxu1 %v1355_v0  ;;  %1123 = vmatprep.mubr.msk.bf16.mxu1 %vm1356_vm0, %v1355_v0  ;;  %s1359_s8 = smov 88   ;;  %vm861_vm5 = vcmask 130048   ;;  %vm863_vm6 = vcmask 195584   ;;  %vm960_vm7 = vcmask 257024  }
  0x37   : > { %s1069_s23 = sshll.u32 %s1594_s25, 3  ;;  %1114 = vmatpush3.bf16.msra.mxu0 %v1234_v1  ;;  %s1360_s9 = smov 80  }
  0x38   : > { %s324_s28 = scalar_lea.vmem %s1583_s0, %s1069_s23  ;;  %1115 = vmatprep.subr.bf16.mxu0 %v1355_v0  ;;  %s1361_s10 = smov 112  }
  0x39   : > { %v1494_v3 = vld [vmem:[%s324_s28] sm:$0xff]  ;;  %s1362_s11 = smov 72   ;;  %s1363_s12 = smov 104  }
  0x3a   : > { %v343_v4 = vpack.c.bf16 %v1494_v3, %v1494_v3  ;;  %s328_s15 = scalar_lea.vmem %s1584_s1, %s1069_s23  ;;  %s1364_s16 = smov 56  }
  0x3b   : > { %1116 = vmatpush3.bf16.msra.mxu0 %v1235_v2  ;;  %v401_v23 = vld [vmem:[%s328_s15] sm:$0xff]  ;;  %s1365_s17 = smov 64   ;;  %s1366_s18 = smov 40  }
  0x3c   : > { %1127 = vmatprep.subr.bf16.mxu0 %v1355_v0  ;;  %vm402_vm3 = vcmp.eq.f32.partialorder %v401_v23, 0.0  ;;  %s1367_s19 = smov 48   ;;  %s1368_s20 = smov 8  }
  0x3d   : > { %v403_v24 = vsel %vm402_vm3, -1e+30, %v1355_v0  ;;  %s1369_s21 = smov 16   ;;  %s1370_s22 = smov 24  }
  0x3e   : > { %1118 = vmatmul.mubr.msk.bf16.vlgmr.msra.gmra.mxu0 %vm356_vm1, %v343_v4 }
  0x3f   : > { %1129 = vmatprep.mubr.msk.bf16.mxu0 %vm1356_vm0, %v1355_v0 }
  0xfe   : > { %v394_v5 = vpop.f32.mrf.mxu0 }
  0xff   : > { %v400_v6 = vmul.f32 0.17677669, %v394_v5  ;;  %v1503_v7 = vpack.c.bf16 %v394_v5, %v394_v5 }
 0x100   : > { %v1119_v8 = vpop.f32.mrf.mxu0 }
 0x101   : > { %v404_v9 = vpack.c.bf16 %v400_v6, %v400_v6  ;;  %407 = vrot.lane.b32.xlu0 %v1503_v7, %s1357_s29  ;;  %s1071_s29 = sshll.u32 %s1594_s25, 2 }
 0x102   : > { %v397_v10 = vpop.f32.mrf.mxu0 }
 0x103   : > { %518 = vrot.lane.b32.xlu1 %v404_v9, %s1358_s30 }
 0x104   : > { %v1120_v11 = vpop.f32.mrf.mxu0 }
 0x105   : > { %520 = vrot.lane.b32.xlu0 %v1503_v7, %s1359_s8 }
 0x107   : > { %630 = vrot.lane.b32.xlu1 %v1503_v7, %s1360_s9  ;;  %s332_s9 = scalar_lea.vmem %s1590_s7, %s1071_s29 }
 0x109   : > { %628 = vrot.lane.b32.xlu0 %v404_v9, %s1361_s10 }
 0x10b   : > { %740 = vrot.lane.b32.xlu1 %v1503_v7, %s1362_s11 }
 0x10d   : > { %738 = vrot.lane.b32.xlu0 %v404_v9, %s1363_s12 }
 0x173   : > { %v408_v12 = vpop.permute.xlu0 %407 }
 0x174   : > { %v414_v13 = vsel %vm409_vm2, %v408_v12, 0 }
 0x175   : > { %1122 = vmatpush3.bf16.xpose.msra.mxu1 %v414_v13  ;;  %v519_v15 = vpop.permute.xlu1 %518 }
 0x176   : > { %1133 = vmatprep.subr.bf16.mxu1 %v1355_v0 }
 0x177   : > { %v521_v14 = vpop.permute.xlu0 %520 }
 0x178   : > { %v526_v16 = vsel %vm409_vm2, %v521_v14, 0 }
 0x179   : > { %v631_v17 = vpop.permute.xlu1 %630 }
 0x17a   : > { %v636_v18 = vsel %vm409_vm2, %v631_v17, 0 }
 0x17b   : > { %v629_v20 = vpop.permute.xlu0 %628 }
 0x17c   : > { %1124 = vmatmul.mubr.msk.bf16.vlgmr.msra.gmra.mxu1 %vm409_vm2, %v404_v9 }
 0x17d   : > { %1134 = vmatpush3.bf16.xpose.msra.mxu1 %v526_v16  ;;  %1135 = vmatprep.mubr.msk.bf16.mxu1 %vm1356_vm0, %v1355_v0  ;;  %v741_v19 = vpop.permute.xlu1 %740 }
 0x17e   : > { %1145 = vmatprep.subr.bf16.mxu1 %v1355_v0  ;;  %v746_v21 = vsel %vm409_vm2, %v741_v19, 0 }
 0x17f   : > { %v739_v22 = vpop.permute.xlu0 %738 }
 0x184   : > { %1136 = vmatmul.mubr.msk.bf16.vlgmr.msra.gmra.mxu1 %vm409_vm2, %v519_v15 }
 0x185   : > { %1146 = vmatpush3.bf16.xpose.msra.mxu1 %v636_v18  ;;  %1147 = vmatprep.mubr.msk.bf16.mxu1 %vm1356_vm0, %v1355_v0 }
 0x186   : > { %1157 = vmatprep.subr.bf16.mxu1 %v1355_v0 }
 0x18c   : > { %1148 = vmatmul.mubr.msk.bf16.vlgmr.msra.gmra.mxu1 %vm409_vm2, %v629_v20 }
 0x18d   : > { %1158 = vmatpush3.bf16.xpose.msra.mxu1 %v746_v21  ;;  %1159 = vmatprep.mubr.msk.bf16.mxu1 %vm1356_vm0, %v1355_v0 }
 0x18e   : > { %1169 = vmatprep.subr.bf16.mxu1 %v1355_v0 }
 0x194   : > { %1160 = vmatmul.mubr.msk.bf16.vlgmr.msra.gmra.mxu1 %vm409_vm2, %v739_v22 }
 0x195   : > { %1173 = vmatprep.mubr.msk.bf16.mxu1 %vm1356_vm0, %v1355_v0 }
 0x23c   : > { %v450_v25 = vpop.f32.mrf.mxu1 }
 0x23d   : > { %v451_v26 = vadd.f32 %v450_v25, %v403_v24 }
 0x23e   : > { %v1125_v27 = vpop.f32.mrf.mxu1 }
 0x23f   : > { %v456_v28 = vsel %vm409_vm2, %v451_v26, -inf }
 0x240   : > { %457 = vmax.xlane.f32.xlu1 %v456_v28  ;;  %v453_v29 = vpop.f32.mrf.mxu1 }
 0x242   : > { %v1126_v30 = vpop.f32.mrf.mxu1 }
 0x244   : > { %v562_v31 = vpop.f32.mrf.mxu1 }
 0x245   : > { %v563_v32 = vadd.f32 %v562_v31, %v403_v24 }
 0x246   : > { %v1137_v33 = vpop.f32.mrf.mxu1 }
 0x247   : > { %v568_v34 = vsel %vm409_vm2, %v563_v32, -inf }
 0x248   : > { %569 = vmax.xlane.f32.xlu0 %v568_v34  ;;  %v565_v35 = vpop.f32.mrf.mxu1 }
 0x24a   : > { %v1138_v36 = vpop.f32.mrf.mxu1 }
 0x24c   : > { %v672_v37 = vpop.f32.mrf.mxu1 }
 0x24d   : > { %v673_v38 = vadd.f32 %v672_v37, %v403_v24 }
 0x24e   : > { %v1149_v39 = vpop.f32.mrf.mxu1 }
 0x24f   : > { %v678_v40 = vsel %vm409_vm2, %v673_v38, -inf  ;;  %v1236_v39 = vld [vmem:[#allocation4 + $0x8] sm:$0xff]  }
 0x250   : > { %679 = vmax.xlane.f32.xlu0 %v678_v40  ;;  %v675_v41 = vpop.f32.mrf.mxu1  ;;  %1170 = vmatpush3.bf16.msra.mxu1 %v1236_v39  ;;  %v1237_v40 = vld [vmem:[#allocation4] sm:$0xff]  }
 0x251   : > { %1171 = vmatprep.subr.bf16.mxu1 %v1355_v0 }
 0x252   : > { %v1150_v42 = vpop.f32.mrf.mxu1 }
 0x254   : > { %v782_v43 = vpop.f32.mrf.mxu1  ;;  %1172 = vmatpush3.bf16.msra.mxu1 %v1237_v40 }
 0x255   : > { %v783_v44 = vadd.f32 %v782_v43, %v403_v24 }
 0x256   : > { %v1161_v45 = vpop.f32.mrf.mxu1 }
 0x257   : > { %v788_v46 = vsel %vm409_vm2, %v783_v44, -inf }
 0x258   : > { %789 = vmax.xlane.f32.xlu1 %v788_v46  ;;  %v785_v47 = vpop.f32.mrf.mxu1 }
 0x25a   : > { %v1162_v48 = vpop.f32.mrf.mxu1 }
 0x2c9   : > { %v458_v49 = vpop.xlane.xlu1 %457 }
 0x2ca   : > { %v459_v50 = vsub.f32 %v451_v26, %v458_v49 }
 0x2cc   : > { %v460_v51 = vmul.f32 1.442695, %v459_v50 }
 0x2ce   : > { %1238 = vpow2.f32 %v460_v51 }
 0x2d1   : > { %v570_v52 = vpop.xlane.xlu0 %569 }
 0x2d2   : > { %v571_v53 = vsub.f32 %v563_v32, %v570_v52 }
 0x2d4   : > { %v572_v54 = vmul.f32 1.442695, %v571_v53 }
 0x2d6   : > { %1240 = vpow2.f32 %v572_v54 }
 0x2d9   : > { %v680_v55 = vpop.xlane.xlu0 %679 }
 0x2da   : > { %v681_v56 = vsub.f32 %v673_v38, %v680_v55  ;;  %v1083_v55 = vld [vmem:[%s1587_s4] ss:$0 sm:$0xff] }
 0x2db   : > { %v1239_v57 = vpop.eup %1238 }
 0x2dc   : > { %v682_v58 = vmul.f32 1.442695, %v681_v56  ;;  %v462_v59 = vsel %vm409_vm2, %v1239_v57, 0.0 }
 0x2dd   : > { %463 = vadd.xlane.f32.xlu0 %v462_v59 }
 0x2de   : > { %1242 = vpow2.f32 %v682_v58 }
 0x2e1   : > { %v790_v1 = vpop.xlane.xlu1 %789 }
 0x2e2   : > { %v791_v2 = vsub.f32 %v783_v44, %v790_v1 }
 0x2e3   : > { %v1241_v60 = vpop.eup %1240 }
 0x2e4   : > { %v574_v61 = vsel %vm409_vm2, %v1241_v60, 0.0  ;;  %v792_v4 = vmul.f32 1.442695, %v791_v2 }
 0x2e5   : > { %575 = vadd.xlane.f32.xlu1 %v574_v61 }
 0x2e6   : > { %1244 = vpow2.f32 %v792_v4 }
 0x2eb   : > { %v1243_v62 = vpop.eup %1242 }
 0x2ec   : > { %v684_v63 = vsel %vm409_vm2, %v1243_v62, 0.0 }
 0x2ed   : > { %685 = vadd.xlane.f32.xlu0 %v684_v63 }
 0x2f3   : > { %v1245_v5 = vpop.eup %1244 }
 0x2f4   : > { %v794_v6 = vsel %vm409_vm2, %v1245_v5, 0.0 }
 0x2f6   : > { %580 = vrot.lane.b32.xlu1 %v1503_v7, %s1364_s16 }
 0x303   : > { %468 = vrot.lane.b32.xlu0 %v1503_v7, %s1365_s17 }
 0x307   : > { %800 = vrot.lane.b32.xlu0 %v1503_v7, %s1366_s18 }
 0x31a   : > { %795 = vadd.xlane.f32.xlu1 %v794_v6 }
 0x32b   : > { %690 = vrot.lane.b32.xlu1 %v1503_v7, %s1367_s19 }
 0x366   : > { %v464_v8 = vpop.xlane.xlu0 %463 }
 0x367   : > { %1246 = vrcp.f32 %v464_v8 }
 0x36e   : > { %v576_v9 = vpop.xlane.xlu1 %575 }
 0x36f   : > { %1248 = vrcp.f32 %v576_v9 }
 0x372   : > { %v581_v15 = vpop.permute.xlu1 %580 }
 0x373   : > { %v586_v18 = vsel %vm473_vm4, %v581_v15, 0 }
 0x374   : > { %v1247_v10 = vpop.eup %1246 }
 0x375   : > { %v466_v12 = vmul.f32 %v1247_v10, %v1239_v57 }
 0x376   : > { %v686_v11 = vpop.xlane.xlu0 %685 }
 0x377   : > { %v467_v16 = vpack.c.bf16 %v466_v12, %v466_v12  ;;  %1250 = vrcp.f32 %v686_v11  ;;  %v1088_v12 = vld [vmem:[#allocation6] ss:$0 sm:$0xff] }
 0x37a   : > { %v469_v13 = vpop.permute.xlu0 %468 }
 0x37b   : > { %v475_v14 = vsel %vm473_vm4, %v469_v13, 0 }
 0x37c   : > { %1128 = vmatpush3.bf16.msra.mxu0 %v475_v14  ;;  %v1249_v17 = vpop.eup %1248 }
 0x37d   : > { %1139 = vmatprep.subr.bf16.mxu0 %v1355_v0  ;;  %v578_v7 = vmul.f32 %v1249_v17, %v1241_v60 }
 0x37e   : > { %v801_v25 = vpop.permute.xlu0 %800 }
 0x37f   : > { %1130 = vmatmul.mubr.msk.bf16.vlgmr.msra.gmra.mxu0 %vm409_vm2, %v467_v16  ;;  %v579_v19 = vpack.c.bf16 %v578_v7, %v578_v7  ;;  %v806_v27 = vsel %vm473_vm4, %v801_v25, 0 }
 0x380   : > { %1140 = vmatpush3.bf16.msra.mxu0 %v586_v18  ;;  %1141 = vmatprep.mubr.msk.bf16.mxu0 %vm1356_vm0, %v1355_v0 }
 0x381   : > { %1151 = vmatprep.subr.bf16.mxu0 %v1355_v0 }
 0x384   : > { %v1251_v20 = vpop.eup %1250 }
 0x385   : > { %v688_v22 = vmul.f32 %v1251_v20, %v1243_v62 }
 0x387   : > { %1142 = vmatmul.mubr.msk.bf16.vlgmr.msra.gmra.mxu0 %vm409_vm2, %v579_v19  ;;  %v689_v26 = vpack.c.bf16 %v688_v22, %v688_v22 }
 0x388   : > { %1153 = vmatprep.mubr.msk.bf16.mxu0 %vm1356_vm0, %v1355_v0 }
 0x3a3   : > { %v796_v21 = vpop.xlane.xlu1 %795 }
 0x3a4   : > { %1252 = vrcp.f32 %v796_v21 }
 0x3a7   : > { %v691_v23 = vpop.permute.xlu1 %690 }
 0x3a8   : > { %v696_v24 = vsel %vm473_vm4, %v691_v23, 0 }
 0x3a9   : > { %1152 = vmatpush3.bf16.msra.mxu0 %v696_v24 }
 0x3aa   : > { %1163 = vmatprep.subr.bf16.mxu0 %v1355_v0 }
 0x3ac   : > { %1154 = vmatmul.mubr.msk.bf16.vlgmr.msra.gmra.mxu0 %vm409_vm2, %v689_v26 }
 0x3ad   : > { %1164 = vmatpush3.bf16.msra.mxu0 %v806_v27  ;;  %1165 = vmatprep.mubr.msk.bf16.mxu0 %vm1356_vm0, %v1355_v0 }
 0x3b1   : > { %v1253_v28 = vpop.eup %1252 }
 0x3b2   : > { %v798_v29 = vmul.f32 %v1253_v28, %v1245_v5 }
 0x3b4   : > { %v799_v30 = vpack.c.bf16 %v798_v29, %v798_v29 }
 0x3b6   : > { %1166 = vmatmul.mubr.msk.bf16.vlgmr.msra.gmra.mxu0 %vm409_vm2, %v799_v30 }
 0x43f   : > { %v511_v31 = vpop.f32.mrf.mxu0 }
 0x441   : > { %v1131_v32 = vpop.f32.mrf.mxu0 }
 0x443   : > { %v514_v33 = vpop.f32.mrf.mxu0 }
 0x445   : > { %v1132_v34 = vpop.f32.mrf.mxu0 }
 0x447   : > { %v622_v35 = vpop.f32.mrf.mxu0 }
 0x448   : > { %849 = vrot.lane.b32.xlu1 %v622_v35, %s1368_s20 }
 0x449   : > { %v1143_v36 = vpop.f32.mrf.mxu0 }
 0x44b   : > { %v625_v37 = vpop.f32.mrf.mxu0 }
 0x44d   : > { %v1144_v38 = vpop.f32.mrf.mxu0 }
 0x46c   : > { %v732_v41 = vpop.f32.mrf.mxu0 }
 0x46d   : > { %853 = vrot.lane.b32.xlu0 %v732_v41, %s1369_s21 }
 0x46e   : > { %v1155_v42 = vpop.f32.mrf.mxu0 }
 0x470   : > { %v735_v43 = vpop.f32.mrf.mxu0 }
 0x472   : > { %v1156_v44 = vpop.f32.mrf.mxu0 }
 0x476   : > { %v842_v45 = vpop.f32.mrf.mxu0 }
 0x477   : > { %857 = vrot.lane.b32.xlu1 %v842_v45, %s1370_s22 }
 0x478   : > { %v1167_v46 = vpop.f32.mrf.mxu0 }
 0x47a   : > { %v845_v47 = vpop.f32.mrf.mxu0 }
 0x47c   : > { %v1168_v48 = vpop.f32.mrf.mxu0 }
 0x4ba   : > { %v850_v49 = vpop.permute.xlu1 %849 }
 0x4bb   : > { %v860_v0 = vsel %vm409_vm2, %v511_v31, %v850_v49 }
 0x4df   : > { %v854_v50 = vpop.permute.xlu0 %853 }
 0x4e0   : > { %v862_v51 = vsel %vm861_vm5, %v860_v0, %v854_v50 }
 0x4e9   : > { %v858_v52 = vpop.permute.xlu1 %857 }
 0x4ea   : > { %v864_v53 = vsel %vm863_vm6, %v862_v51, %v858_v52 }
 0x4eb   : > { %v865_v54 = vpack.c.bf16 %v864_v53, %v864_v53 }
 0x4ed   : > { %1174 = vmatmul.mubr.msk.bf16.vlgmr.msra.gmra.mxu1 %vm356_vm1, %v865_v54 }
 0x5ad   : > { %v922_v56 = vpop.f32.mrf.mxu1 }
 0x5ae   : > { %v923_v57 = vadd.f32 %v1083_v55, %v922_v56 }
 0x5af   : > { %v1175_v58 = vpop.f32.mrf.mxu1 }
 0x5b0   : > { %v928_v59 = vadd.f32 %v923_v57, %v1494_v3  ;;  %v1087_v3 = vld [vmem:[%s1588_s5] ss:$0 sm:$0xff] }
 0x5b1   : > { %v925_v60 = vpop.f32.mrf.mxu1 }
 0x5b2   : > { %v931_v61 = vsel %vm356_vm1, %v928_v59, 0.0 }
 0x5b3   : > { %932 = vadd.xlane.f32.xlu0 %v931_v61  ;;  %v1176_v62 = vpop.f32.mrf.mxu1 }
 0x63c   : > { %v933_v63 = vpop.xlane.xlu0 %932 }
 0x63d   : > { %v935_v1 = vmul.f32 0.03125, %v933_v63 }
 0x63f   : > { %v936_v2 = vsub.f32 %v928_v59, %v935_v1 }
 0x641   : > { %v937_v4 = vmul.f32 %v936_v2, %v936_v2 }
 0x643   : > { %v938_v5 = vsel %vm356_vm1, %v937_v4, 0.0 }
 0x644   : > { %939 = vadd.xlane.f32.xlu1 %v938_v5 }
 0x6cd   : > { %v940_v6 = vpop.xlane.xlu1 %939 }
 0x6ce   : > { %v941_v8 = vmul.f32 0.03125, %v940_v6 }
 0x6d0   : > { %v942_v9 = vadd.f32 1e-05, %v941_v8 }
 0x6d2   : > { %1254 = vrsqrt.f32 %v942_v9 }
 0x6df   : > { %v1255_v10 = vpop.eup %1254 }
 0x6e0   : > { %v944_v11 = vmul.f32 %v1255_v10, %v936_v2 }
 0x6e2   : > { %v951_v13 = vmul.f32 %v1087_v3, %v944_v11 }
 0x6e4   : > { %v958_v14 = vadd.f32 %v1088_v12, %v951_v13 }
 0x6e6   : > { %v959_v15 = vpack.c.bf16 %v958_v14, %v958_v14 }
 0x6e8   : > { %961 = vst.msk [vmem:[%s332_s9] sm:$0xf] %vm960_vm7, %v959_v15 }
 0x6e9 PF: > { %s19_s24 = sadd.s32 1, %s1348_s24  }
 0x6ea   : > { %p16_p2 = scmp.ge.s32.totalorder %s19_s24, 4  }
 0x6ec   :  { %18 = sbr.rel (!%p16_p2) target bundleno = 2 (0x2), region = 94 }
 0x6f1   :  { %981 = vsyncpa [#allocation3], 1 }
 0x6f2   :  { %983 = vsyncpa [#allocation3 + $0x1], 1 }
 0x6f3   :  { %984 = vsyncpa [#allocation5], 1 }

// kernel: decoder_block_forward.4
= control target key start
LH: loop header
LB: loop body
LE: loop exit
PB: predicated region body
PF: predicated region fallthrough
CT: control target
= control target key end

     0   :  { %s1443_s30 = smov 0   ;;  %s1588_s0 = inlined_call_operand.vmem [shape: f32[2,8,32], index: 0, kind: input, shape index: {}]   ;;  %s1589_s1 = inlined_call_operand.vmem [shape: f32[2,8,32], index: 1, kind: input, shape index: {}]   ;;  %s1590_s2 = inlined_call_operand.vmem [shape: bf16[2,8,32], index: 2, kind: input, shape index: {}]   ;;  %s1591_s3 = inlined_call_operand.vmem [shape: f32[2,1,8], index: 3, kind: input, shape index: {}]   ;;  %s1592_s4 = inlined_call_operand.vmem [shape: bf16[32,96], index: 4, kind: input, shape index: {}]   ;;  %s1593_s5 = inlined_call_operand.vmem [shape: bf16[32,32], index: 5, kind: input, shape index: {}]   ;;  %s1594_s6 = inlined_call_operand.vmem [shape: f32[1,32], index: 6, kind: input, shape index: {}]   ;;  %s1595_s7 = inlined_call_operand.vmem [shape: f32[1,32], index: 7, kind: input, shape index: {}]   ;;  %s1596_s8 = inlined_call_operand.vmem [shape: f32[1,32], index: 8, kind: input, shape index: {}]   ;;  %s1597_s9 = inlined_call_operand.vmem [shape: bf16[2,8,32], index: 9, kind: output, shape index: {}]  }
   0x1 LB: > { %s1197_s10 = sadd.s32 4294967295, %s1381_s30   ;;  %p1201_p0 = scmp.ge.s32.totalorder %s1381_s30, 1  ;;  %s1381_s30 = sphi %s1443_s30, %s19_s30  }
   0x2   : > { %p312_p1 = scmp.lt.s32.totalorder %s1381_s30, 3 }
   0x4   : > { %p313_p2 = pnand %p1201_p0, %p312_p1 }
   0x5   : > { %s1383_s13 = smov (!%p313_p2), 96   ;;  %p357_p3 = scmp.lt.s32.totalorder (!%p313_p2), %s1197_s10, 1 }
   0x6   : > { %316 = sbr.rel (%p313_p2) target bundleno = 1796 (0x704), region = 56  ;;  %s1386_s24 = smov (!%p313_p2), 112  }
   0x7   : > { %s1387_s25 = smov (!%p313_p2), 120   ;;  %s1388_s26 = smov (!%p313_p2), 104  }
   0x8   : > { %s1389_s27 = smov (!%p313_p2), 64   ;;  %s1390_s18 = smov (!%p313_p2), 8  }
   0x9   : > { %s1391_s21 = smov (!%p313_p2), 16   ;;  %s1392_s22 = smov (!%p313_p2), 24  }
   0xb   : > { %v1353_v0 = vld [vmem:[%s1592_s4 + $0x8] sm:$0xff]   ;;  %v1354_v1 = vld [vmem:[%s1592_s4] sm:$0xff]   ;;  %v1384_v2 = vmov 0.0   ;;  %vm1385_vm0 = vmmov 0   ;;  %s1599_s10 = smov (!%p357_p3, %s1197_s10), 1  ;;  %vm399_vm1 = vcmask 261120   ;;  %v553_v33 = vlaneseq }
   0xc   : > { %447 = vrot.lane.b32.xlu0 %v1353_v0, %s1383_s13  ;;  %1255 = vmatprep.subr.bf16.mxu0 %v1384_v2  ;;  %s1204_s16 = sshll.u32 %s1599_s10, 2  ;;  %s1202_s20 = sshll.u32 %s1599_s10, 3  ;;  %vm558_vm2 = vcmask 64512   ;;  %vm620_vm4 = vcmask 1043456   ;;  %vm1010_vm5 = vcmask 130048   ;;  %vm1012_vm6 = vcmask 195584  }
   0xd   : > { %1263 = vmatprep.subr.bf16.mxu1 %v1384_v2  ;;  %1256 = vmatpush3.bf16.msra.mxu0 %v1353_v0  ;;  %s368_s19 = scalar_lea.vmem %s1590_s2, %s1204_s16  ;;  %s364_s23 = scalar_lea.vmem %s1589_s1, %s1202_s20  ;;  %v554_v35 = vshrl.u32 %v553_v33, 7  ;;  %vm1109_vm7 = vcmask 257024  }
   0xe   : > { %1257 = vmatprep.subr.bf16.mxu0 %v1384_v2  ;;  %1259 = vmatprep.mubr.msk.bf16.mxu0 %vm1385_vm0, %v1384_v2  ;;  %v1472_v3 = vld [vmem:[%s368_s19] sm:$0xf]  ;;  %s360_s11 = scalar_lea.vmem %s1588_s0, %s1202_s20  ;;  %s371_s14 = scalar_lea.vmem %s1591_s3, %s1599_s10 }
   0xf   : > { %1267 = vmatprep.mubr.msk.bf16.mxu1 %vm1385_vm0, %v1384_v2  ;;  %v443_v5 = vld [vmem:[%s364_s23] sm:$0xff]  ;;  %v555_v36 = vsub.s32 0, %v554_v35  ;;  %s375_s12 = scalar_lea.vmem %s1597_s9, %s1204_s16 }
  0x10   : > { %445 = vrot.lane.b32.xlu0 %v1354_v1, %s1383_s13  ;;  %v444_v7 = vpack.c.bf16 %v443_v5, %v443_v5  ;;  %v494_v29 = vld [vmem:[%s360_s11] sm:$0xff] }
  0x11   : > { %1258 = vmatpush3.bf16.msra.mxu0 %v1354_v1  ;;  %v495_v30 = vpack.c.bf16 %v494_v29, %v494_v29  ;;  %v546_v34 = vld [vmem:[%s371_s14] sm:$0x1] }
  0x12   : > { %1271 = vmatprep.subr.bf16.mxu0 %v1384_v2  ;;  %vm547_vm3 = vcmp.eq.f32.partialorder %v546_v34, 0.0 }
  0x13   : > { %v548_v37 = vsel %vm547_vm3, -1e+30, %v1384_v2 }
  0x14   : > { %1260 = vmatmul.mubr.msk.bf16.vlgmr.msra.gmra.mxu0 %vm399_vm1, %v1472_v3  ;;  %v556_v38 = vrot.slane %v548_v37, %v555_v36 }
  0x15   : > { %1275 = vmatprep.mubr.msk.bf16.mxu0 %vm1385_vm0, %v1384_v2 }
  0x7e   : > { %v448_v4 = vpop.permute.xlu0 %447 }
  0x7f   : > { %1264 = vmatpush3.bf16.msra.mxu1 %v448_v4 }
  0x80   : > { %1265 = vmatprep.subr.bf16.mxu1 %v1384_v2 }
  0x82   : > { %v446_v6 = vpop.permute.xlu0 %445 }
  0x83   : > { %1266 = vmatpush3.bf16.msra.mxu1 %v446_v6 }
  0x84   : > { %1279 = vmatprep.subr.bf16.mxu1 %v1384_v2 }
  0x86   : > { %1268 = vmatmul.mubr.msk.bf16.vlgmr.msra.gmra.mxu1 %vm399_vm1, %v444_v7 }
  0x87   : > { %1281 = vmatprep.mubr.msk.bf16.mxu1 %vm1385_vm0, %v1384_v2 }
  0xd4   : > { %v437_v8 = vpop.f32.mrf.mxu0 }
  0xd5   : > { %v545_v12 = vmul.f32 0.17677669, %v437_v8 }
  0xd6   : > { %v1261_v9 = vpop.f32.mrf.mxu0 }
  0xd7   : > { %v549_v16 = vpack.c.bf16 %v545_v12, %v545_v12 }
  0xd8   : > { %v440_v10 = vpop.f32.mrf.mxu0 }
  0xda   : > { %v1262_v11 = vpop.f32.mrf.mxu0 }
 0x146   : > { %v488_v13 = vpop.f32.mrf.mxu1 }
 0x147   : > { %v550_v14 = vpack.c.bf16 %v488_v13, %v488_v13 }
 0x148   : > { %v1269_v15 = vpop.f32.mrf.mxu1 }
 0x149   : > { %779 = vrot.lane.b32.xlu0 %v550_v14, %s1386_s24  ;;  %668 = vrot.lane.b32.xlu1 %v550_v14, %s1387_s25  ;;  %v563_v17 = vsel %vm558_vm2, %v550_v14, 0 }
 0x14a   : > { %v491_v18 = vpop.f32.mrf.mxu1  ;;  %1280 = vmatpush3.bf16.xpose.msra.mxu1 %v563_v17 }
 0x14b   : > { %1291 = vmatprep.subr.bf16.mxu1 %v1384_v2 }
 0x14c   : > { %v1270_v19 = vpop.f32.mrf.mxu1 }
 0x14d   : > { %889 = vrot.lane.b32.xlu0 %v550_v14, %s1388_s26  ;;  %665 = vrot.lane.b32.xlu1 %v549_v16, %s1387_s25 }
 0x151   : > { %777 = vrot.lane.b32.xlu1 %v549_v16, %s1386_s24  ;;  %1282 = vmatmul.mubr.msk.bf16.vlgmr.msra.gmra.mxu1 %vm558_vm2, %v549_v16 }
 0x152   : > { %1293 = vmatprep.mubr.msk.bf16.mxu1 %vm1385_vm0, %v1384_v2  ;;  %498 = vrot.lane.b32.xlu0 %v1353_v0, %s1389_s27 }
 0x155   : > { %887 = vrot.lane.b32.xlu1 %v549_v16, %s1388_s26 }
 0x159   : > { %496 = vrot.lane.b32.xlu1 %v1354_v1, %s1389_s27 }
 0x1bb   : > { %v780_v20 = vpop.permute.xlu0 %779  ;;  %v669_v21 = vpop.permute.xlu1 %668 }
 0x1bc   : > { %v674_v22 = vsel %vm558_vm2, %v669_v21, 0  ;;  %v785_v26 = vsel %vm558_vm2, %v780_v20, 0 }
 0x1bd   : > { %1292 = vmatpush3.bf16.xpose.msra.mxu1 %v674_v22 }
 0x1be   : > { %1303 = vmatprep.subr.bf16.mxu1 %v1384_v2 }
 0x1bf   : > { %v666_v23 = vpop.permute.xlu1 %665  ;;  %v890_v24 = vpop.permute.xlu0 %889 }
 0x1c0   : > { %v895_v32 = vsel %vm558_vm2, %v890_v24, 0 }
 0x1c3   : > { %v778_v25 = vpop.permute.xlu1 %777 }
 0x1c4   : > { %1294 = vmatmul.mubr.msk.bf16.vlgmr.msra.gmra.mxu1 %vm558_vm2, %v666_v23  ;;  %v499_v27 = vpop.permute.xlu0 %498 }
 0x1c5   : > { %1304 = vmatpush3.bf16.xpose.msra.mxu1 %v785_v26  ;;  %1305 = vmatprep.mubr.msk.bf16.mxu1 %vm1385_vm0, %v1384_v2 }
 0x1c6   : > { %1315 = vmatprep.subr.bf16.mxu1 %v1384_v2  ;;  %1272 = vmatpush3.bf16.msra.mxu0 %v499_v27 }
 0x1c7   : > { %v888_v28 = vpop.permute.xlu1 %887  ;;  %1273 = vmatprep.subr.bf16.mxu0 %v1384_v2 }
 0x1cb   : > { %v497_v31 = vpop.permute.xlu1 %496 }
 0x1cc   : > { %1306 = vmatmul.mubr.msk.bf16.vlgmr.msra.gmra.mxu1 %vm558_vm2, %v778_v25  ;;  %1274 = vmatpush3.bf16.msra.mxu0 %v497_v31 }
 0x1cd   : > { %1316 = vmatpush3.bf16.xpose.msra.mxu1 %v895_v32  ;;  %1317 = vmatprep.mubr.msk.bf16.mxu1 %vm1385_vm0, %v1384_v2 }
 0x1ce   : > { %1285 = vmatprep.subr.bf16.mxu0 %v1384_v2  ;;  %1327 = vmatprep.subr.bf16.mxu1 %v1384_v2 }
 0x1cf   : > { %1276 = vmatmul.mubr.msk.bf16.vlgmr.msra.gmra.mxu0 %vm399_vm1, %v495_v30 }
 0x1d0   : > { %1287 = vmatprep.mubr.msk.bf16.mxu0 %vm1385_vm0, %v1384_v2 }
 0x1d4   : > { %1318 = vmatmul.mubr.msk.bf16.vlgmr.msra.gmra.mxu1 %vm558_vm2, %v888_v28 }
 0x1d5   : > { %1331 = vmatprep.mubr.msk.bf16.mxu1 %vm1385_vm0, %v1384_v2 }
 0x211   : > { %v599_v39 = vpop.f32.mrf.mxu1 }
 0x212   : > { %v600_v40 = vadd.f32 %v599_v39, %v556_v38 }
 0x213   : > { %v1283_v41 = vpop.f32.mrf.mxu1 }
 0x214   : > { %v605_v42 = vsel %vm558_vm2, %v600_v40, -inf }
 0x215   : > { %606 = vmax.xlane.f32.xlu0 %v605_v42  ;;  %v602_v43 = vpop.f32.mrf.mxu1 }
 0x217   : > { %v1284_v44 = vpop.f32.mrf.mxu1 }
 0x284   : > { %v710_v45 = vpop.f32.mrf.mxu1 }
 0x285   : > { %v711_v46 = vadd.f32 %v710_v45, %v556_v38 }
 0x286   : > { %v1295_v47 = vpop.f32.mrf.mxu1 }
 0x287   : > { %v716_v48 = vsel %vm558_vm2, %v711_v46, -inf }
 0x288   : > { %717 = vmax.xlane.f32.xlu1 %v716_v48  ;;  %v713_v49 = vpop.f32.mrf.mxu1 }
 0x28a   : > { %v1296_v50 = vpop.f32.mrf.mxu1 }
 0x28c   : > { %v821_v51 = vpop.f32.mrf.mxu1 }
 0x28d   : > { %v822_v52 = vadd.f32 %v821_v51, %v556_v38 }
 0x28e   : > { %v1307_v53 = vpop.f32.mrf.mxu1 }
 0x28f   : > { %v827_v54 = vsel %vm558_vm2, %v822_v52, -inf  ;;  %v539_v55 = vpop.f32.mrf.mxu0  ;;  %v1355_v53 = vld [vmem:[%s1593_s5 + $0x8] sm:$0xff]  }
 0x290   : > { %828 = vmax.xlane.f32.xlu0 %v827_v54  ;;  %v824_v56 = vpop.f32.mrf.mxu1  ;;  %v551_v57 = vpack.c.bf16 %v539_v55, %v539_v55  ;;  %1328 = vmatpush3.bf16.msra.mxu1 %v1355_v53 }
 0x291   : > { %v1277_v58 = vpop.f32.mrf.mxu0  ;;  %1329 = vmatprep.subr.bf16.mxu1 %v1384_v2  ;;  %v1356_v56 = vld [vmem:[%s1593_s5] sm:$0xff]  }
 0x292   : > { %v1308_v59 = vpop.f32.mrf.mxu1  ;;  %v622_v60 = vsel %vm620_vm4, %v551_v57, 0 }
 0x293   : > { %v542_v61 = vpop.f32.mrf.mxu0  ;;  %1286 = vmatpush3.bf16.msra.mxu0 %v622_v60 }
 0x294   : > { %v931_v62 = vpop.f32.mrf.mxu1  ;;  %1297 = vmatprep.subr.bf16.mxu0 %v1384_v2  ;;  %1330 = vmatpush3.bf16.msra.mxu1 %v1356_v56 }
 0x295   : > { %v932_v63 = vadd.f32 %v931_v62, %v556_v38  ;;  %v1278_v0 = vpop.f32.mrf.mxu0 }
 0x296   : > { %v1319_v1 = vpop.f32.mrf.mxu1 }
 0x297   : > { %v937_v4 = vsel %vm558_vm2, %v932_v63, -inf }
 0x298   : > { %938 = vmax.xlane.f32.xlu0 %v937_v4  ;;  %v934_v5 = vpop.f32.mrf.mxu1 }
 0x29a   : > { %v1320_v6 = vpop.f32.mrf.mxu1 }
 0x29e   : > { %v607_v7 = vpop.xlane.xlu0 %606 }
 0x29f   : > { %v608_v8 = vsub.f32 %v600_v40, %v607_v7 }
 0x2a1   : > { %v609_v9 = vmul.f32 1.442695, %v608_v8 }
 0x2a3   : > { %1357 = vpow2.f32 %v609_v9 }
 0x2b0   : > { %v1358_v10 = vpop.eup %1357 }
 0x2b1   : > { %v611_v11 = vsel %vm558_vm2, %v1358_v10, 0.0 }
 0x2b2   : > { %612 = vadd.xlane.f32.xlu1 %v611_v11  ;;  %v1219_v11 = vld [vmem:[%s1594_s6] ss:$0 sm:$0xff] }
 0x2c3   : > { %729 = vrot.lane.b32.xlu1 %v551_v57, %s1387_s25 }
 0x311   : > { %v718_v12 = vpop.xlane.xlu1 %717 }
 0x312   : > { %v719_v13 = vsub.f32 %v711_v46, %v718_v12  ;;  %v386_v12 = vunpack.c.l.bf16 %v1472_v3 }
 0x314   : > { %v720_v14 = vmul.f32 1.442695, %v719_v13 }
 0x316   : > { %1359 = vpow2.f32 %v720_v14 }
 0x319   : > { %v829_v15 = vpop.xlane.xlu0 %828 }
 0x31a   : > { %v830_v16 = vsub.f32 %v822_v52, %v829_v15 }
 0x31c   : > { %v831_v17 = vmul.f32 1.442695, %v830_v16 }
 0x31e   : > { %1361 = vpow2.f32 %v831_v17 }
 0x321   : > { %v939_v18 = vpop.xlane.xlu0 %938 }
 0x322   : > { %v940_v19 = vsub.f32 %v932_v63, %v939_v18 }
 0x323   : > { %v1360_v20 = vpop.eup %1359 }
 0x324   : > { %v941_v21 = vmul.f32 1.442695, %v940_v19  ;;  %v722_v22 = vsel %vm558_vm2, %v1360_v20, 0.0 }
 0x325   : > { %723 = vadd.xlane.f32.xlu0 %v722_v22 }
 0x326   : > { %1363 = vpow2.f32 %v941_v21 }
 0x32b   : > { %v1362_v23 = vpop.eup %1361 }
 0x32c   : > { %v833_v24 = vsel %vm558_vm2, %v1362_v23, 0.0 }
 0x32d   : > { %834 = vadd.xlane.f32.xlu1 %v833_v24 }
 0x333   : > { %v1364_v25 = vpop.eup %1363 }
 0x334   : > { %v943_v26 = vsel %vm558_vm2, %v1364_v25, 0.0 }
 0x335   : > { %944 = vadd.xlane.f32.xlu0 %v943_v26 }
 0x33b   : > { %v613_v27 = vpop.xlane.xlu1 %612 }
 0x33c   : > { %1365 = vrcp.f32 %v613_v27 }
 0x33e   : > { %949 = vrot.lane.b32.xlu1 %v551_v57, %s1388_s26 }
 0x33f   : > { %v730_v29 = vpop.permute.xlu1 %729 }
 0x340   : > { %v735_v32 = vsel %vm620_vm4, %v730_v29, 0 }
 0x349   : > { %v1366_v28 = vpop.eup %1365 }
 0x34a   : > { %v615_v30 = vmul.f32 %v1366_v28, %v1358_v10  ;;  %v1223_v28 = vld [vmem:[%s1595_s7] ss:$0 sm:$0xff] }
 0x34b   : > { %839 = vrot.lane.b32.xlu0 %v551_v57, %s1386_s24 }
 0x34c   : > { %v616_v31 = vpack.c.bf16 %v615_v30, %v615_v30  ;;  %v1224_v30 = vld [vmem:[%s1596_s8] ss:$0 sm:$0xff] }
 0x34e   : > { %1288 = vmatmul.mubr.msk.bf16.vlgmr.msra.gmra.mxu0 %vm558_vm2, %v616_v31 }
 0x34f   : > { %1298 = vmatpush3.bf16.msra.mxu0 %v735_v32  ;;  %1299 = vmatprep.mubr.msk.bf16.mxu0 %vm1385_vm0, %v1384_v2 }
 0x350   : > { %1309 = vmatprep.subr.bf16.mxu0 %v1384_v2 }
 0x3ae   : > { %v724_v33 = vpop.xlane.xlu0 %723 }
 0x3af   : > { %1367 = vrcp.f32 %v724_v33 }
 0x3b6   : > { %v835_v34 = vpop.xlane.xlu1 %834 }
 0x3b7   : > { %1369 = vrcp.f32 %v835_v34 }
 0x3ba   : > { %v950_v43 = vpop.permute.xlu1 %949 }
 0x3bb   : > { %v955_v45 = vsel %vm620_vm4, %v950_v43, 0 }
 0x3bc   : > { %v1368_v35 = vpop.eup %1367 }
 0x3bd   : > { %v726_v36 = vmul.f32 %v1368_v35, %v1360_v20 }
 0x3be   : > { %v945_v37 = vpop.xlane.xlu0 %944 }
 0x3bf   : > { %1371 = vrcp.f32 %v945_v37  ;;  %v727_v38 = vpack.c.bf16 %v726_v36, %v726_v36 }
 0x3c1   : > { %1300 = vmatmul.mubr.msk.bf16.vlgmr.msra.gmra.mxu0 %vm558_vm2, %v727_v38 }
 0x3c2   : > { %v840_v39 = vpop.permute.xlu0 %839  ;;  %1311 = vmatprep.mubr.msk.bf16.mxu0 %vm1385_vm0, %v1384_v2 }
 0x3c3   : > { %v845_v40 = vsel %vm620_vm4, %v840_v39, 0 }
 0x3c4   : > { %v1370_v41 = vpop.eup %1369  ;;  %1310 = vmatpush3.bf16.msra.mxu0 %v845_v40 }
 0x3c5   : > { %1321 = vmatprep.subr.bf16.mxu0 %v1384_v2  ;;  %v837_v42 = vmul.f32 %v1370_v41, %v1362_v23 }
 0x3c7   : > { %v838_v44 = vpack.c.bf16 %v837_v42, %v837_v42 }
 0x3c9   : > { %1312 = vmatmul.mubr.msk.bf16.vlgmr.msra.gmra.mxu0 %vm558_vm2, %v838_v44 }
 0x3ca   : > { %1322 = vmatpush3.bf16.msra.mxu0 %v955_v45  ;;  %1323 = vmatprep.mubr.msk.bf16.mxu0 %vm1385_vm0, %v1384_v2 }
 0x3cc   : > { %v1372_v46 = vpop.eup %1371 }
 0x3cd   : > { %v947_v47 = vmul.f32 %v1372_v46, %v1364_v25 }
 0x3cf   : > { %v948_v48 = vpack.c.bf16 %v947_v47, %v947_v47 }
 0x3d1   : > { %1324 = vmatmul.mubr.msk.bf16.vlgmr.msra.gmra.mxu0 %vm558_vm2, %v948_v48 }
 0x40e   : > { %v658_v49 = vpop.f32.mrf.mxu0 }
 0x410   : > { %v1289_v50 = vpop.f32.mrf.mxu0 }
 0x412   : > { %v661_v51 = vpop.f32.mrf.mxu0 }
 0x414   : > { %v1290_v52 = vpop.f32.mrf.mxu0 }
 0x481   : > { %v771_v54 = vpop.f32.mrf.mxu0 }
 0x482   : > { %998 = vrot.lane.b32.xlu1 %v771_v54, %s1390_s18 }
 0x483   : > { %v1301_v55 = vpop.f32.mrf.mxu0 }
 0x485   : > { %v774_v57 = vpop.f32.mrf.mxu0 }
 0x487   : > { %v1302_v58 = vpop.f32.mrf.mxu0 }
 0x489   : > { %v881_v59 = vpop.f32.mrf.mxu0 }
 0x48a   : > { %1002 = vrot.lane.b32.xlu0 %v881_v59, %s1391_s21 }
 0x48b   : > { %v1313_v60 = vpop.f32.mrf.mxu0 }
 0x48d   : > { %v884_v61 = vpop.f32.mrf.mxu0 }
 0x48f   : > { %v1314_v62 = vpop.f32.mrf.mxu0 }
 0x491   : > { %v991_v63 = vpop.f32.mrf.mxu0 }
 0x492   : > { %1006 = vrot.lane.b32.xlu1 %v991_v63, %s1392_s22 }
 0x493   : > { %v1325_v2 = vpop.f32.mrf.mxu0 }
 0x495   : > { %v994_v0 = vpop.f32.mrf.mxu0 }
 0x497   : > { %v1326_v1 = vpop.f32.mrf.mxu0 }
 0x4f4   : > { %v999_v4 = vpop.permute.xlu1 %998 }
 0x4f5   : > { %v1009_v6 = vsel %vm558_vm2, %v658_v49, %v999_v4 }
 0x4fc   : > { %v1003_v5 = vpop.permute.xlu0 %1002 }
 0x4fd   : > { %v1011_v7 = vsel %vm1010_vm5, %v1009_v6, %v1003_v5 }
 0x504   : > { %v1007_v8 = vpop.permute.xlu1 %1006 }
 0x505   : > { %v1013_v9 = vsel %vm1012_vm6, %v1011_v7, %v1007_v8 }
 0x506   : > { %v1014_v10 = vpack.c.bf16 %v1013_v9, %v1013_v9 }
 0x508   : > { %1332 = vmatmul.mubr.msk.bf16.vlgmr.msra.gmra.mxu1 %vm399_vm1, %v1014_v10 }
 0x5c8   : > { %v1071_v13 = vpop.f32.mrf.mxu1 }
 0x5c9   : > { %v1072_v14 = vadd.f32 %v1219_v11, %v1071_v13 }
 0x5ca   : > { %v1333_v15 = vpop.f32.mrf.mxu1 }
 0x5cb   : > { %v1077_v16 = vadd.f32 %v1072_v14, %v386_v12 }
 0x5cc   : > { %v1074_v17 = vpop.f32.mrf.mxu1 }
 0x5cd   : > { %v1080_v18 = vsel %vm399_vm1, %v1077_v16, 0.0 }
 0x5ce   : > { %1081 = vadd.xlane.f32.xlu0 %v1080_v18  ;;  %v1334_v19 = vpop.f32.mrf.mxu1 }
 0x657   : > { %v1082_v20 = vpop.xlane.xlu0 %1081 }
 0x658   : > { %v1084_v21 = vmul.f32 0.03125, %v1082_v20 }
 0x65a   : > { %v1085_v22 = vsub.f32 %v1077_v16, %v1084_v21 }
 0x65c   : > { %v1086_v23 = vmul.f32 %v1085_v22, %v1085_v22 }
 0x65e   : > { %v1087_v24 = vsel %vm399_vm1, %v1086_v23, 0.0 }
 0x65f   : > { %1088 = vadd.xlane.f32.xlu1 %v1087_v24 }
 0x6e8   : > { %v1089_v25 = vpop.xlane.xlu1 %1088 }
 0x6e9   : > { %v1090_v26 = vmul.f32 0.03125, %v1089_v25 }
 0x6eb   : > { %v1091_v3 = vadd.f32 1e-05, %v1090_v26 }
 0x6ed   : > { %1373 = vrsqrt.f32 %v1091_v3 }
 0x6fa   : > { %v1374_v27 = vpop.eup %1373 }
 0x6fb   : > { %v1093_v29 = vmul.f32 %v1374_v27, %v1085_v22 }
 0x6fd   : > { %v1100_v31 = vmul.f32 %v1223_v28, %v1093_v29 }
 0x6ff   : > { %v1107_v32 = vadd.f32 %v1224_v30, %v1100_v31 }
 0x701   : > { %v1108_v33 = vpack.c.bf16 %v1107_v32, %v1107_v32 }
 0x703   : > { %1110 = vst.msk [vmem:[%s375_s12] sm:$0xf] %vm1109_vm7, %v1108_v33 }
 0x704 PF: > { %s19_s30 = sadd.s32 1, %s1381_s30  }
 0x705   : > { %p16_p4 = scmp.ge.s32.totalorder %s19_s30, 4  }
 0x707   :  { %18 = sbr.rel (!%p16_p4) target bundleno = 1 (0x1), region = 95 }

</bundles_post_ra>
